<compile_context>
chip_gen: v7x
topology: tpu7x:2x2x1
jax: 0.10.0
libtpu: 0.0.40
codegen_flags: <defaults>
</compile_context>

<pallas_src>
import functools

import jax
import jax.numpy as jnp
from jax import lax
from jax.experimental import pallas as pl
from jax.experimental.pallas import tpu as pltpu

N_RELATIONS = 20                     # len(relation_id_map) without 'nothing'
N_TRANSITIVES = N_RELATIONS ** 3     # len(all_possible_transitives) = 8000
SAMPLE_CT = 200                      # self.sample_ct

_NEG_BIG = -3.0e38                   # plain Python float (NOT a jnp constant)
_BIG_IDX = 1 << 30                   # plain Python int
_UNROLL = 8                          # serial-loop unroll factor


def _make_sample_topk_kernel(train: bool, k: int, n_valid: int):
    """Build the kernel. `train` selects Gumbel-top-k sampling vs. plain top-k."""

    def kernel(*refs):
        if train:
            probs_ref, u_ref, idx_ref, scores_ref = refs
        else:
            probs_ref, idx_ref, scores_ref = refs
            u_ref = None

        R, C = probs_ref.shape

        # ---- one-time elementwise setup: clamp + (optional) Gumbel scoring ----
        p = jnp.clip(probs_ref[...], 0.0, 1.0)             # torch.clamp(probs, 0, 1)
        row = lax.broadcasted_iota(jnp.int32, (R, C), 0)
        col = lax.broadcasted_iota(jnp.int32, (R, C), 1)
        valid = (row * C + col) < n_valid                   # mask the padded tail

        if train:
            # torch.multinomial(p, k) without replacement == top-k of log(p)+Gumbel
            gumbel = -jnp.log(-jnp.log(u_ref[...]))
            scores = jnp.log(jnp.maximum(p, 1e-30)) + gumbel
        else:
            # torch.topk(p, k): scores ARE the clamped probs
            scores = p
        scores = jnp.where(valid, scores, _NEG_BIG)
        scores_ref[...] = scores                            # written ONCE

        riota = lax.broadcasted_iota(jnp.int32, (R, 1), 0)  # row indices
        liota = lax.broadcasted_iota(jnp.int32, (1, C), 1)  # lane indices
        row_max0 = jnp.max(scores, axis=1, keepdims=True)   # (R,1) per-row maxima

        # ---- one extraction step: hierarchical argmax + single-row refresh ----
        def one_step(step, row_max):
            m = jnp.max(row_max)                                         # global max
            r_sel = jnp.min(jnp.where(row_max >= m, riota, _BIG_IDX))    # winning row
            row_sc = scores_ref[pl.ds(r_sel, 1), :]                      # (1, C) load
            c_sel = jnp.min(jnp.where(row_sc >= m, liota, _BIG_IDX))     # winning lane
            idx_ref[step] = r_sel * C + c_sel
            # remove the selected element and refresh only this row's maximum
            new_row = jnp.where(liota == c_sel, _NEG_BIG, row_sc)
            scores_ref[pl.ds(r_sel, 1), :] = new_row                     # (1, C) store
            return jnp.where(riota == r_sel, jnp.max(new_row), row_max)

        # ---- K-step extraction, 8x unrolled inside a plain fori_loop ----
        n_blocks = k // _UNROLL

        def block_body(blk, row_max):
            base = blk * _UNROLL
            for u in range(_UNROLL):
                row_max = one_step(base + u, row_max)
            return row_max

        row_max = row_max0
        if n_blocks > 0:
            row_max = lax.fori_loop(0, n_blocks, block_body, row_max)
        for step in range(n_blocks * _UNROLL, k):            # static remainder (< 8)
            row_max = one_step(step, row_max)

    return kernel


@functools.partial(jax.jit, static_argnames=("sample_ct", "phase"))
def dsrlm_sample_transitives(transitivity_probs, key, sample_ct=SAMPLE_CT, phase="train"):
    """Tensor path of DSRLMModel.forward.

    Returns (sampled_idx[int32, K], probs[f32, K], transitives[int32, K, 3]).
    """
    n = transitivity_probs.shape[0]
    C = 256
    R = pl.cdiv(pl.cdiv(n, C), 8) * 8            # pad to whole (8,128) tiles
    n_pad = R * C

    p32 = transitivity_probs.astype(jnp.float32)
    probs_pad = jnp.zeros((n_pad,), jnp.float32).at[:n].set(p32).reshape(R, C)

    train = phase == "train"
    kernel = _make_sample_topk_kernel(train, sample_ct, n)

    vmem_spec = pl.BlockSpec(memory_space=pltpu.MemorySpace.VMEM)
    if train:
        # Uniform noise for the Gumbel trick (only generated / DMA'd in train).
        u = jax.random.uniform(key, (R, C), jnp.float32, minval=1e-6, maxval=1.0 - 1e-6)
        args, in_specs = (probs_pad, u), [vmem_spec, vmem_spec]
    else:
        args, in_specs = (probs_pad,), [vmem_spec]

    idx = pl.pallas_call(
        kernel,
        out_shape=jax.ShapeDtypeStruct((sample_ct,), jnp.int32),
        in_specs=in_specs,
        out_specs=pl.BlockSpec(memory_space=pltpu.MemorySpace.SMEM),
        scratch_shapes=[pltpu.VMEM((R, C), jnp.float32)],   # mutable scores
    )(*args)

    # probs = clamp(params)[idx]; gathering in the wrapper keeps this path
    # differentiable w.r.t. transitivity_probs (matches torch autograd semantics).
    probs = jnp.clip(p32, 0.0, 1.0)[idx]

    # all_possible_transitives[i] == (i // 400, (i // 20) % 20, i % 20) — pure glue.
    a = idx // (N_RELATIONS * N_RELATIONS)
    b = (idx // N_RELATIONS) % N_RELATIONS
    c = idx % N_RELATIONS
    transitives = jnp.stack([a, b, c], axis=-1)
    return idx, probs, transitives


# TODO(synk): get_contexts / prompt_gpt / extract_facts (OpenAI API + regex) and the
# Scallop 'difftopbottomkclauses' reasoner have no Pallas equivalent and are omitted.


if __name__ == "__main__":
    # Deterministic parameter init, exactly as in __init__:
    #   self.transitivity_probs = torch.tensor(np.ones(8000) / 10)
    transitivity_probs = jnp.ones((N_TRANSITIVES,), jnp.float32) / 10.0

    key = jax.random.PRNGKey(0)

    # Train phase: multinomial (without replacement) via Gumbel-top-k in the kernel.
    idx_tr, probs_tr, trans_tr = dsrlm_sample_transitives(
        transitivity_probs, key, SAMPLE_CT, phase="train")
    jax.block_until_ready((idx_tr, probs_tr, trans_tr))
    assert idx_tr.shape == (SAMPLE_CT,)
    assert probs_tr.shape == (SAMPLE_CT,)
    assert trans_tr.shape == (SAMPLE_CT, 3)
    assert bool(jnp.all(idx_tr >= 0)) and bool(jnp.all(idx_tr < N_TRANSITIVES))
    # without replacement -> all sampled indices unique
    assert int(jnp.unique(idx_tr).shape[0]) == SAMPLE_CT
    # gathered probs must equal clamp(params)[idx]
    assert bool(jnp.allclose(probs_tr, jnp.clip(transitivity_probs, 0, 1)[idx_tr]))

    # Eval phase: top-k. Sanity-check values against lax.top_k on a perturbed
    # (still deterministic) parameter vector so the ordering is non-trivial.
    perturbed = transitivity_probs + 1e-3 * jax.random.normal(
        jax.random.PRNGKey(1), (N_TRANSITIVES,), jnp.float32)
    idx_ev, probs_ev, _ = dsrlm_sample_transitives(
        perturbed, key, SAMPLE_CT, phase="eval")
    jax.block_until_ready((idx_ev, probs_ev))
    ref_vals, _ = lax.top_k(jnp.clip(perturbed, 0.0, 1.0), SAMPLE_CT)
    assert bool(jnp.allclose(probs_ev, ref_vals, atol=1e-6))
    # values must also equal clamp(params)[idx]
    assert bool(jnp.allclose(probs_ev, jnp.clip(perturbed, 0, 1)[idx_ev], atol=1e-6))

    print("KERNEL_OK")
</pallas_src>

<mosaic_0001>
module attributes {stable_mosaic.version = 11 : i64} {
  func.func @kernel(%arg0: memref<32x256xf32, #tpu.memory_space<vmem>>, %arg1: memref<32x256xf32, #tpu.memory_space<vmem>>, %arg2: memref<200xi32, #tpu.memory_space<smem>>, %arg3: memref<32x256xf32, #tpu.memory_space<vmem>>) attributes {dimension_semantics = [], scalar_prefetch = 0 : i64, scratch_operands = 1 : i64, tpu.core_type = #tpu.core_type<tc>} {
    %c0 = arith.constant 0 : index
    %c0_0 = arith.constant 0 : index
    %0 = vector.load %arg0[%c0, %c0_0] : memref<32x256xf32, #tpu.memory_space<vmem>>, vector<32x256xf32>
    %cst = arith.constant 0.000000e+00 : f32
    %cst_1 = arith.constant 1.000000e+00 : f32
    %1 = vector.broadcast %cst : f32 to vector<32x256xf32>
    %2 = arith.maximumf %1, %0 : vector<32x256xf32>
    %3 = vector.broadcast %cst_1 : f32 to vector<32x256xf32>
    %4 = arith.minimumf %3, %2 : vector<32x256xf32>
    %5 = tpu.iota {dimensions = array<i32: 0>} : vector<32x256xi32>
    %6 = tpu.iota {dimensions = array<i32: 1>} : vector<32x256xi32>
    %c256_i32 = arith.constant 256 : i32
    %7 = vector.broadcast %c256_i32 : i32 to vector<32x256xi32>
    %8 = arith.muli %5, %7 : vector<32x256xi32>
    %9 = arith.addi %8, %6 : vector<32x256xi32>
    %c8000_i32 = arith.constant 8000 : i32
    %10 = vector.broadcast %c8000_i32 : i32 to vector<32x256xi32>
    %11 = arith.cmpi slt, %9, %10 : vector<32x256xi32>
    %c0_2 = arith.constant 0 : index
    %c0_3 = arith.constant 0 : index
    %12 = vector.load %arg1[%c0_2, %c0_3] : memref<32x256xf32, #tpu.memory_space<vmem>>, vector<32x256xf32>
    %13 = math.log %12 : vector<32x256xf32>
    %cst_4 = arith.constant 0.000000e+00 : f32
    %14 = vector.broadcast %cst_4 : f32 to vector<32x256xf32>
    %15 = arith.subf %14, %13 : vector<32x256xf32>
    %16 = math.log %15 : vector<32x256xf32>
    %cst_5 = arith.constant 0.000000e+00 : f32
    %17 = vector.broadcast %cst_5 : f32 to vector<32x256xf32>
    %18 = arith.subf %17, %16 : vector<32x256xf32>
    %cst_6 = arith.constant 1.000000e-30 : f32
    %19 = vector.broadcast %cst_6 : f32 to vector<32x256xf32>
    %20 = arith.maximumf %4, %19 : vector<32x256xf32>
    %21 = math.log %20 : vector<32x256xf32>
    %22 = arith.addf %21, %18 : vector<32x256xf32>
    %cst_7 = arith.constant -3.000000e+38 : f32
    %23 = vector.broadcast %cst_7 : f32 to vector<32x256xf32>
    %24 = arith.select %11, %22, %23 : vector<32x256xi1>, vector<32x256xf32>
    %c0_8 = arith.constant 0 : index
    %c0_9 = arith.constant 0 : index
    %25 = vector.load %arg3[%c0_8, %c0_9] : memref<32x256xf32, #tpu.memory_space<vmem>>, vector<32x256xf32>
    tpu.vector_store %arg3[%c0_8, %c0_9], %24 {strides = array<i32>} : memref<32x256xf32, #tpu.memory_space<vmem>>, vector<32x256xf32>,
    %26 = tpu.iota {dimensions = array<i32: 0>} : vector<32x1xi32>
    %27 = tpu.iota {dimensions = array<i32: 1>} : vector<1x256xi32>
    %cst_10 = arith.constant dense<0xFF800000> : vector<32xf32>
    %28 = vector.multi_reduction <maximumf>, %24, %cst_10 [1] : vector<32x256xf32> to vector<32xf32>
    %29 = vector.shape_cast %28 : vector<32xf32> to vector<32x1xf32>
    %c0_i32 = arith.constant 0 : i32
    %c25_i32 = arith.constant 25 : i32
    %30 = arith.addi %c0_i32, %c25_i32 : i32
    %c1_i32 = arith.constant 1 : i32
    %31 = scf.for %arg4 = %c0_i32 to %30 step %c1_i32 iter_args(%arg5 = %29) -> (vector<32x1xf32>)  : i32 {
      %c8_i32 = arith.constant 8 : i32
      %32 = arith.muli %arg4, %c8_i32 : i32
      %c0_i32_12 = arith.constant 0 : i32
      %33 = arith.addi %32, %c0_i32_12 : i32
      %34 = vector.shape_cast %arg5 : vector<32x1xf32> to vector<1x32x1xf32>
      %cst_13 = arith.constant dense<0xFF800000> : vector<1xf32>
      %35 = vector.multi_reduction <maximumf>, %34, %cst_13 [1, 2] : vector<1x32x1xf32> to vector<1xf32>
      %36 = vector.shape_cast %35 : vector<1xf32> to vector<1x1x1xf32>
      %37 = vector.extract %36[0, 0, 0] : f32 from vector<1x1x1xf32>
      %38 = vector.broadcast %37 : f32 to vector<32x1xf32>
      %39 = arith.cmpf oge, %arg5, %38 : vector<32x1xf32>
      %c1073741824_i32 = arith.constant 1073741824 : i32
      %40 = vector.broadcast %c1073741824_i32 : i32 to vector<32x1xi32>
      %41 = arith.select %39, %26, %40 : vector<32x1xi1>, vector<32x1xi32>
      %42 = vector.shape_cast %41 : vector<32x1xi32> to vector<1x32x1xi32>
      %cst_14 = arith.constant dense<2147483647> : vector<1xi32>
      %43 = vector.multi_reduction <minsi>, %42, %cst_14 [1, 2] : vector<1x32x1xi32> to vector<1xi32>
      %44 = vector.shape_cast %43 : vector<1xi32> to vector<1x1x1xi32>
      %45 = vector.extract %44[0, 0, 0] : i32 from vector<1x1x1xi32>
      %46 = arith.index_cast %45 : i32 to index
      %c0_15 = arith.constant 0 : index
      %47 = vector.load %arg3[%46, %c0_15] : memref<32x256xf32, #tpu.memory_space<vmem>>, vector<1x256xf32>
      %48 = vector.broadcast %37 : f32 to vector<1x256xf32>
      %49 = arith.cmpf oge, %47, %48 : vector<1x256xf32>
      %c1073741824_i32_16 = arith.constant 1073741824 : i32
      %50 = vector.broadcast %c1073741824_i32_16 : i32 to vector<1x256xi32>
      %51 = arith.select %49, %27, %50 : vector<1x256xi1>, vector<1x256xi32>
      %52 = vector.shape_cast %51 : vector<1x256xi32> to vector<1x1x256xi32>
      %cst_17 = arith.constant dense<2147483647> : vector<1xi32>
      %53 = vector.multi_reduction <minsi>, %52, %cst_17 [1, 2] : vector<1x1x256xi32> to vector<1xi32>
      %54 = vector.shape_cast %53 : vector<1xi32> to vector<1x1x1xi32>
      %55 = vector.extract %54[0, 0, 0] : i32 from vector<1x1x1xi32>
      %c256_i32_18 = arith.constant 256 : i32
      %56 = arith.muli %45, %c256_i32_18 : i32
      %57 = arith.addi %56, %55 : i32
      %58 = arith.index_cast %33 : i32 to index
      %59 = memref.load %arg2[%58] : memref<200xi32, #tpu.memory_space<smem>>
      memref.store %57, %arg2[%58] : memref<200xi32, #tpu.memory_space<smem>>
      %60 = vector.broadcast %55 : i32 to vector<1x256xi32>
      %61 = arith.cmpi eq, %27, %60 : vector<1x256xi32>
      %cst_19 = arith.constant -3.000000e+38 : f32
      %62 = vector.broadcast %cst_19 : f32 to vector<1x256xf32>
      %63 = arith.select %61, %62, %47 : vector<1x256xi1>, vector<1x256xf32>
      %64 = arith.index_cast %45 : i32 to index
      %c0_20 = arith.constant 0 : index
      %65 = vector.load %arg3[%64, %c0_20] : memref<32x256xf32, #tpu.memory_space<vmem>>, vector<1x256xf32>
      tpu.vector_store %arg3[%64, %c0_20], %63 {strides = array<i32>} : memref<32x256xf32, #tpu.memory_space<vmem>>, vector<1x256xf32>,
      %66 = vector.broadcast %45 : i32 to vector<32x1xi32>
      %67 = arith.cmpi eq, %26, %66 : vector<32x1xi32>
      %68 = vector.shape_cast %63 : vector<1x256xf32> to vector<1x1x256xf32>
      %cst_21 = arith.constant dense<0xFF800000> : vector<1xf32>
      %69 = vector.multi_reduction <maximumf>, %68, %cst_21 [1, 2] : vector<1x1x256xf32> to vector<1xf32>
      %70 = vector.shape_cast %69 : vector<1xf32> to vector<1x1x1xf32>
      %71 = vector.extract %70[0, 0, 0] : f32 from vector<1x1x1xf32>
      %72 = vector.broadcast %71 : f32 to vector<32x1xf32>
      %73 = arith.select %67, %72, %arg5 : vector<32x1xi1>, vector<32x1xf32>
      %c1_i32_22 = arith.constant 1 : i32
      %74 = arith.addi %32, %c1_i32_22 : i32
      %75 = vector.shape_cast %73 : vector<32x1xf32> to vector<1x32x1xf32>
      %cst_23 = arith.constant dense<0xFF800000> : vector<1xf32>
      %76 = vector.multi_reduction <maximumf>, %75, %cst_23 [1, 2] : vector<1x32x1xf32> to vector<1xf32>
      %77 = vector.shape_cast %76 : vector<1xf32> to vector<1x1x1xf32>
      %78 = vector.extract %77[0, 0, 0] : f32 from vector<1x1x1xf32>
      %79 = vector.broadcast %78 : f32 to vector<32x1xf32>
      %80 = arith.cmpf oge, %73, %79 : vector<32x1xf32>
      %c1073741824_i32_24 = arith.constant 1073741824 : i32
      %81 = vector.broadcast %c1073741824_i32_24 : i32 to vector<32x1xi32>
      %82 = arith.select %80, %26, %81 : vector<32x1xi1>, vector<32x1xi32>
      %83 = vector.shape_cast %82 : vector<32x1xi32> to vector<1x32x1xi32>
      %cst_25 = arith.constant dense<2147483647> : vector<1xi32>
      %84 = vector.multi_reduction <minsi>, %83, %cst_25 [1, 2] : vector<1x32x1xi32> to vector<1xi32>
      %85 = vector.shape_cast %84 : vector<1xi32> to vector<1x1x1xi32>
      %86 = vector.extract %85[0, 0, 0] : i32 from vector<1x1x1xi32>
      %87 = arith.index_cast %86 : i32 to index
      %c0_26 = arith.constant 0 : index
      %88 = vector.load %arg3[%87, %c0_26] : memref<32x256xf32, #tpu.memory_space<vmem>>, vector<1x256xf32>
      %89 = vector.broadcast %78 : f32 to vector<1x256xf32>
      %90 = arith.cmpf oge, %88, %89 : vector<1x256xf32>
      %c1073741824_i32_27 = arith.constant 1073741824 : i32
      %91 = vector.broadcast %c1073741824_i32_27 : i32 to vector<1x256xi32>
      %92 = arith.select %90, %27, %91 : vector<1x256xi1>, vector<1x256xi32>
      %93 = vector.shape_cast %92 : vector<1x256xi32> to vector<1x1x256xi32>
      %cst_28 = arith.constant dense<2147483647> : vector<1xi32>
      %94 = vector.multi_reduction <minsi>, %93, %cst_28 [1, 2] : vector<1x1x256xi32> to vector<1xi32>
      %95 = vector.shape_cast %94 : vector<1xi32> to vector<1x1x1xi32>
      %96 = vector.extract %95[0, 0, 0] : i32 from vector<1x1x1xi32>
      %c256_i32_29 = arith.constant 256 : i32
      %97 = arith.muli %86, %c256_i32_29 : i32
      %98 = arith.addi %97, %96 : i32
      %99 = arith.index_cast %74 : i32 to index
      %100 = memref.load %arg2[%99] : memref<200xi32, #tpu.memory_space<smem>>
      memref.store %98, %arg2[%99] : memref<200xi32, #tpu.memory_space<smem>>
      %101 = vector.broadcast %96 : i32 to vector<1x256xi32>
      %102 = arith.cmpi eq, %27, %101 : vector<1x256xi32>
      %cst_30 = arith.constant -3.000000e+38 : f32
      %103 = vector.broadcast %cst_30 : f32 to vector<1x256xf32>
      %104 = arith.select %102, %103, %88 : vector<1x256xi1>, vector<1x256xf32>
      %105 = arith.index_cast %86 : i32 to index
      %c0_31 = arith.constant 0 : index
      %106 = vector.load %arg3[%105, %c0_31] : memref<32x256xf32, #tpu.memory_space<vmem>>, vector<1x256xf32>
      tpu.vector_store %arg3[%105, %c0_31], %104 {strides = array<i32>} : memref<32x256xf32, #tpu.memory_space<vmem>>, vector<1x256xf32>,
      %107 = vector.broadcast %86 : i32 to vector<32x1xi32>
      %108 = arith.cmpi eq, %26, %107 : vector<32x1xi32>
      %109 = vector.shape_cast %104 : vector<1x256xf32> to vector<1x1x256xf32>
      %cst_32 = arith.constant dense<0xFF800000> : vector<1xf32>
      %110 = vector.multi_reduction <maximumf>, %109, %cst_32 [1, 2] : vector<1x1x256xf32> to vector<1xf32>
      %111 = vector.shape_cast %110 : vector<1xf32> to vector<1x1x1xf32>
      %112 = vector.extract %111[0, 0, 0] : f32 from vector<1x1x1xf32>
      %113 = vector.broadcast %112 : f32 to vector<32x1xf32>
      %114 = arith.select %108, %113, %73 : vector<32x1xi1>, vector<32x1xf32>
      %c2_i32 = arith.constant 2 : i32
      %115 = arith.addi %32, %c2_i32 : i32
      %116 = vector.shape_cast %114 : vector<32x1xf32> to vector<1x32x1xf32>
      %cst_33 = arith.constant dense<0xFF800000> : vector<1xf32>
      %117 = vector.multi_reduction <maximumf>, %116, %cst_33 [1, 2] : vector<1x32x1xf32> to vector<1xf32>
      %118 = vector.shape_cast %117 : vector<1xf32> to vector<1x1x1xf32>
      %119 = vector.extract %118[0, 0, 0] : f32 from vector<1x1x1xf32>
      %120 = vector.broadcast %119 : f32 to vector<32x1xf32>
      %121 = arith.cmpf oge, %114, %120 : vector<32x1xf32>
      %c1073741824_i32_34 = arith.constant 1073741824 : i32
      %122 = vector.broadcast %c1073741824_i32_34 : i32 to vector<32x1xi32>
      %123 = arith.select %121, %26, %122 : vector<32x1xi1>, vector<32x1xi32>
      %124 = vector.shape_cast %123 : vector<32x1xi32> to vector<1x32x1xi32>
      %cst_35 = arith.constant dense<2147483647> : vector<1xi32>
      %125 = vector.multi_reduction <minsi>, %124, %cst_35 [1, 2] : vector<1x32x1xi32> to vector<1xi32>
      %126 = vector.shape_cast %125 : vector<1xi32> to vector<1x1x1xi32>
      %127 = vector.extract %126[0, 0, 0] : i32 from vector<1x1x1xi32>
      %128 = arith.index_cast %127 : i32 to index
      %c0_36 = arith.constant 0 : index
      %129 = vector.load %arg3[%128, %c0_36] : memref<32x256xf32, #tpu.memory_space<vmem>>, vector<1x256xf32>
      %130 = vector.broadcast %119 : f32 to vector<1x256xf32>
      %131 = arith.cmpf oge, %129, %130 : vector<1x256xf32>
      %c1073741824_i32_37 = arith.constant 1073741824 : i32
      %132 = vector.broadcast %c1073741824_i32_37 : i32 to vector<1x256xi32>
      %133 = arith.select %131, %27, %132 : vector<1x256xi1>, vector<1x256xi32>
      %134 = vector.shape_cast %133 : vector<1x256xi32> to vector<1x1x256xi32>
      %cst_38 = arith.constant dense<2147483647> : vector<1xi32>
      %135 = vector.multi_reduction <minsi>, %134, %cst_38 [1, 2] : vector<1x1x256xi32> to vector<1xi32>
      %136 = vector.shape_cast %135 : vector<1xi32> to vector<1x1x1xi32>
      %137 = vector.extract %136[0, 0, 0] : i32 from vector<1x1x1xi32>
      %c256_i32_39 = arith.constant 256 : i32
      %138 = arith.muli %127, %c256_i32_39 : i32
      %139 = arith.addi %138, %137 : i32
      %140 = arith.index_cast %115 : i32 to index
      %141 = memref.load %arg2[%140] : memref<200xi32, #tpu.memory_space<smem>>
      memref.store %139, %arg2[%140] : memref<200xi32, #tpu.memory_space<smem>>
      %142 = vector.broadcast %137 : i32 to vector<1x256xi32>
      %143 = arith.cmpi eq, %27, %142 : vector<1x256xi32>
      %cst_40 = arith.constant -3.000000e+38 : f32
      %144 = vector.broadcast %cst_40 : f32 to vector<1x256xf32>
      %145 = arith.select %143, %144, %129 : vector<1x256xi1>, vector<1x256xf32>
      %146 = arith.index_cast %127 : i32 to index
      %c0_41 = arith.constant 0 : index
      %147 = vector.load %arg3[%146, %c0_41] : memref<32x256xf32, #tpu.memory_space<vmem>>, vector<1x256xf32>
      tpu.vector_store %arg3[%146, %c0_41], %145 {strides = array<i32>} : memref<32x256xf32, #tpu.memory_space<vmem>>, vector<1x256xf32>,
      %148 = vector.broadcast %127 : i32 to vector<32x1xi32>
      %149 = arith.cmpi eq, %26, %148 : vector<32x1xi32>
      %150 = vector.shape_cast %145 : vector<1x256xf32> to vector<1x1x256xf32>
      %cst_42 = arith.constant dense<0xFF800000> : vector<1xf32>
      %151 = vector.multi_reduction <maximumf>, %150, %cst_42 [1, 2] : vector<1x1x256xf32> to vector<1xf32>
      %152 = vector.shape_cast %151 : vector<1xf32> to vector<1x1x1xf32>
      %153 = vector.extract %152[0, 0, 0] : f32 from vector<1x1x1xf32>
      %154 = vector.broadcast %153 : f32 to vector<32x1xf32>
      %155 = arith.select %149, %154, %114 : vector<32x1xi1>, vector<32x1xf32>
      %c3_i32 = arith.constant 3 : i32
      %156 = arith.addi %32, %c3_i32 : i32
      %157 = vector.shape_cast %155 : vector<32x1xf32> to vector<1x32x1xf32>
      %cst_43 = arith.constant dense<0xFF800000> : vector<1xf32>
      %158 = vector.multi_reduction <maximumf>, %157, %cst_43 [1, 2] : vector<1x32x1xf32> to vector<1xf32>
      %159 = vector.shape_cast %158 : vector<1xf32> to vector<1x1x1xf32>
      %160 = vector.extract %159[0, 0, 0] : f32 from vector<1x1x1xf32>
      %161 = vector.broadcast %160 : f32 to vector<32x1xf32>
      %162 = arith.cmpf oge, %155, %161 : vector<32x1xf32>
      %c1073741824_i32_44 = arith.constant 1073741824 : i32
      %163 = vector.broadcast %c1073741824_i32_44 : i32 to vector<32x1xi32>
      %164 = arith.select %162, %26, %163 : vector<32x1xi1>, vector<32x1xi32>
      %165 = vector.shape_cast %164 : vector<32x1xi32> to vector<1x32x1xi32>
      %cst_45 = arith.constant dense<2147483647> : vector<1xi32>
      %166 = vector.multi_reduction <minsi>, %165, %cst_45 [1, 2] : vector<1x32x1xi32> to vector<1xi32>
      %167 = vector.shape_cast %166 : vector<1xi32> to vector<1x1x1xi32>
      %168 = vector.extract %167[0, 0, 0] : i32 from vector<1x1x1xi32>
      %169 = arith.index_cast %168 : i32 to index
      %c0_46 = arith.constant 0 : index
      %170 = vector.load %arg3[%169, %c0_46] : memref<32x256xf32, #tpu.memory_space<vmem>>, vector<1x256xf32>
      %171 = vector.broadcast %160 : f32 to vector<1x256xf32>
      %172 = arith.cmpf oge, %170, %171 : vector<1x256xf32>
      %c1073741824_i32_47 = arith.constant 1073741824 : i32
      %173 = vector.broadcast %c1073741824_i32_47 : i32 to vector<1x256xi32>
      %174 = arith.select %172, %27, %173 : vector<1x256xi1>, vector<1x256xi32>
      %175 = vector.shape_cast %174 : vector<1x256xi32> to vector<1x1x256xi32>
      %cst_48 = arith.constant dense<2147483647> : vector<1xi32>
      %176 = vector.multi_reduction <minsi>, %175, %cst_48 [1, 2] : vector<1x1x256xi32> to vector<1xi32>
      %177 = vector.shape_cast %176 : vector<1xi32> to vector<1x1x1xi32>
      %178 = vector.extract %177[0, 0, 0] : i32 from vector<1x1x1xi32>
      %c256_i32_49 = arith.constant 256 : i32
      %179 = arith.muli %168, %c256_i32_49 : i32
      %180 = arith.addi %179, %178 : i32
      %181 = arith.index_cast %156 : i32 to index
      %182 = memref.load %arg2[%181] : memref<200xi32, #tpu.memory_space<smem>>
      memref.store %180, %arg2[%181] : memref<200xi32, #tpu.memory_space<smem>>
      %183 = vector.broadcast %178 : i32 to vector<1x256xi32>
      %184 = arith.cmpi eq, %27, %183 : vector<1x256xi32>
      %cst_50 = arith.constant -3.000000e+38 : f32
      %185 = vector.broadcast %cst_50 : f32 to vector<1x256xf32>
      %186 = arith.select %184, %185, %170 : vector<1x256xi1>, vector<1x256xf32>
      %187 = arith.index_cast %168 : i32 to index
      %c0_51 = arith.constant 0 : index
      %188 = vector.load %arg3[%187, %c0_51] : memref<32x256xf32, #tpu.memory_space<vmem>>, vector<1x256xf32>
      tpu.vector_store %arg3[%187, %c0_51], %186 {strides = array<i32>} : memref<32x256xf32, #tpu.memory_space<vmem>>, vector<1x256xf32>,
      %189 = vector.broadcast %168 : i32 to vector<32x1xi32>
      %190 = arith.cmpi eq, %26, %189 : vector<32x1xi32>
      %191 = vector.shape_cast %186 : vector<1x256xf32> to vector<1x1x256xf32>
      %cst_52 = arith.constant dense<0xFF800000> : vector<1xf32>
      %192 = vector.multi_reduction <maximumf>, %191, %cst_52 [1, 2] : vector<1x1x256xf32> to vector<1xf32>
      %193 = vector.shape_cast %192 : vector<1xf32> to vector<1x1x1xf32>
      %194 = vector.extract %193[0, 0, 0] : f32 from vector<1x1x1xf32>
      %195 = vector.broadcast %194 : f32 to vector<32x1xf32>
      %196 = arith.select %190, %195, %155 : vector<32x1xi1>, vector<32x1xf32>
      %c4_i32 = arith.constant 4 : i32
      %197 = arith.addi %32, %c4_i32 : i32
      %198 = vector.shape_cast %196 : vector<32x1xf32> to vector<1x32x1xf32>
      %cst_53 = arith.constant dense<0xFF800000> : vector<1xf32>
      %199 = vector.multi_reduction <maximumf>, %198, %cst_53 [1, 2] : vector<1x32x1xf32> to vector<1xf32>
      %200 = vector.shape_cast %199 : vector<1xf32> to vector<1x1x1xf32>
      %201 = vector.extract %200[0, 0, 0] : f32 from vector<1x1x1xf32>
      %202 = vector.broadcast %201 : f32 to vector<32x1xf32>
      %203 = arith.cmpf oge, %196, %202 : vector<32x1xf32>
      %c1073741824_i32_54 = arith.constant 1073741824 : i32
      %204 = vector.broadcast %c1073741824_i32_54 : i32 to vector<32x1xi32>
      %205 = arith.select %203, %26, %204 : vector<32x1xi1>, vector<32x1xi32>
      %206 = vector.shape_cast %205 : vector<32x1xi32> to vector<1x32x1xi32>
      %cst_55 = arith.constant dense<2147483647> : vector<1xi32>
      %207 = vector.multi_reduction <minsi>, %206, %cst_55 [1, 2] : vector<1x32x1xi32> to vector<1xi32>
      %208 = vector.shape_cast %207 : vector<1xi32> to vector<1x1x1xi32>
      %209 = vector.extract %208[0, 0, 0] : i32 from vector<1x1x1xi32>
      %210 = arith.index_cast %209 : i32 to index
      %c0_56 = arith.constant 0 : index
      %211 = vector.load %arg3[%210, %c0_56] : memref<32x256xf32, #tpu.memory_space<vmem>>, vector<1x256xf32>
      %212 = vector.broadcast %201 : f32 to vector<1x256xf32>
      %213 = arith.cmpf oge, %211, %212 : vector<1x256xf32>
      %c1073741824_i32_57 = arith.constant 1073741824 : i32
      %214 = vector.broadcast %c1073741824_i32_57 : i32 to vector<1x256xi32>
      %215 = arith.select %213, %27, %214 : vector<1x256xi1>, vector<1x256xi32>
      %216 = vector.shape_cast %215 : vector<1x256xi32> to vector<1x1x256xi32>
      %cst_58 = arith.constant dense<2147483647> : vector<1xi32>
      %217 = vector.multi_reduction <minsi>, %216, %cst_58 [1, 2] : vector<1x1x256xi32> to vector<1xi32>
      %218 = vector.shape_cast %217 : vector<1xi32> to vector<1x1x1xi32>
      %219 = vector.extract %218[0, 0, 0] : i32 from vector<1x1x1xi32>
      %c256_i32_59 = arith.constant 256 : i32
      %220 = arith.muli %209, %c256_i32_59 : i32
      %221 = arith.addi %220, %219 : i32
      %222 = arith.index_cast %197 : i32 to index
      %223 = memref.load %arg2[%222] : memref<200xi32, #tpu.memory_space<smem>>
      memref.store %221, %arg2[%222] : memref<200xi32, #tpu.memory_space<smem>>
      %224 = vector.broadcast %219 : i32 to vector<1x256xi32>
      %225 = arith.cmpi eq, %27, %224 : vector<1x256xi32>
      %cst_60 = arith.constant -3.000000e+38 : f32
      %226 = vector.broadcast %cst_60 : f32 to vector<1x256xf32>
      %227 = arith.select %225, %226, %211 : vector<1x256xi1>, vector<1x256xf32>
      %228 = arith.index_cast %209 : i32 to index
      %c0_61 = arith.constant 0 : index
      %229 = vector.load %arg3[%228, %c0_61] : memref<32x256xf32, #tpu.memory_space<vmem>>, vector<1x256xf32>
      tpu.vector_store %arg3[%228, %c0_61], %227 {strides = array<i32>} : memref<32x256xf32, #tpu.memory_space<vmem>>, vector<1x256xf32>,
      %230 = vector.broadcast %209 : i32 to vector<32x1xi32>
      %231 = arith.cmpi eq, %26, %230 : vector<32x1xi32>
      %232 = vector.shape_cast %227 : vector<1x256xf32> to vector<1x1x256xf32>
      %cst_62 = arith.constant dense<0xFF800000> : vector<1xf32>
      %233 = vector.multi_reduction <maximumf>, %232, %cst_62 [1, 2] : vector<1x1x256xf32> to vector<1xf32>
      %234 = vector.shape_cast %233 : vector<1xf32> to vector<1x1x1xf32>
      %235 = vector.extract %234[0, 0, 0] : f32 from vector<1x1x1xf32>
      %236 = vector.broadcast %235 : f32 to vector<32x1xf32>
      %237 = arith.select %231, %236, %196 : vector<32x1xi1>, vector<32x1xf32>
      %c5_i32 = arith.constant 5 : i32
      %238 = arith.addi %32, %c5_i32 : i32
      %239 = vector.shape_cast %237 : vector<32x1xf32> to vector<1x32x1xf32>
      %cst_63 = arith.constant dense<0xFF800000> : vector<1xf32>
      %240 = vector.multi_reduction <maximumf>, %239, %cst_63 [1, 2] : vector<1x32x1xf32> to vector<1xf32>
      %241 = vector.shape_cast %240 : vector<1xf32> to vector<1x1x1xf32>
      %242 = vector.extract %241[0, 0, 0] : f32 from vector<1x1x1xf32>
      %243 = vector.broadcast %242 : f32 to vector<32x1xf32>
      %244 = arith.cmpf oge, %237, %243 : vector<32x1xf32>
      %c1073741824_i32_64 = arith.constant 1073741824 : i32
      %245 = vector.broadcast %c1073741824_i32_64 : i32 to vector<32x1xi32>
      %246 = arith.select %244, %26, %245 : vector<32x1xi1>, vector<32x1xi32>
      %247 = vector.shape_cast %246 : vector<32x1xi32> to vector<1x32x1xi32>
      %cst_65 = arith.constant dense<2147483647> : vector<1xi32>
      %248 = vector.multi_reduction <minsi>, %247, %cst_65 [1, 2] : vector<1x32x1xi32> to vector<1xi32>
      %249 = vector.shape_cast %248 : vector<1xi32> to vector<1x1x1xi32>
      %250 = vector.extract %249[0, 0, 0] : i32 from vector<1x1x1xi32>
      %251 = arith.index_cast %250 : i32 to index
      %c0_66 = arith.constant 0 : index
      %252 = vector.load %arg3[%251, %c0_66] : memref<32x256xf32, #tpu.memory_space<vmem>>, vector<1x256xf32>
      %253 = vector.broadcast %242 : f32 to vector<1x256xf32>
      %254 = arith.cmpf oge, %252, %253 : vector<1x256xf32>
      %c1073741824_i32_67 = arith.constant 1073741824 : i32
      %255 = vector.broadcast %c1073741824_i32_67 : i32 to vector<1x256xi32>
      %256 = arith.select %254, %27, %255 : vector<1x256xi1>, vector<1x256xi32>
      %257 = vector.shape_cast %256 : vector<1x256xi32> to vector<1x1x256xi32>
      %cst_68 = arith.constant dense<2147483647> : vector<1xi32>
      %258 = vector.multi_reduction <minsi>, %257, %cst_68 [1, 2] : vector<1x1x256xi32> to vector<1xi32>
      %259 = vector.shape_cast %258 : vector<1xi32> to vector<1x1x1xi32>
      %260 = vector.extract %259[0, 0, 0] : i32 from vector<1x1x1xi32>
      %c256_i32_69 = arith.constant 256 : i32
      %261 = arith.muli %250, %c256_i32_69 : i32
      %262 = arith.addi %261, %260 : i32
      %263 = arith.index_cast %238 : i32 to index
      %264 = memref.load %arg2[%263] : memref<200xi32, #tpu.memory_space<smem>>
      memref.store %262, %arg2[%263] : memref<200xi32, #tpu.memory_space<smem>>
      %265 = vector.broadcast %260 : i32 to vector<1x256xi32>
      %266 = arith.cmpi eq, %27, %265 : vector<1x256xi32>
      %cst_70 = arith.constant -3.000000e+38 : f32
      %267 = vector.broadcast %cst_70 : f32 to vector<1x256xf32>
      %268 = arith.select %266, %267, %252 : vector<1x256xi1>, vector<1x256xf32>
      %269 = arith.index_cast %250 : i32 to index
      %c0_71 = arith.constant 0 : index
      %270 = vector.load %arg3[%269, %c0_71] : memref<32x256xf32, #tpu.memory_space<vmem>>, vector<1x256xf32>
      tpu.vector_store %arg3[%269, %c0_71], %268 {strides = array<i32>} : memref<32x256xf32, #tpu.memory_space<vmem>>, vector<1x256xf32>,
      %271 = vector.broadcast %250 : i32 to vector<32x1xi32>
      %272 = arith.cmpi eq, %26, %271 : vector<32x1xi32>
      %273 = vector.shape_cast %268 : vector<1x256xf32> to vector<1x1x256xf32>
      %cst_72 = arith.constant dense<0xFF800000> : vector<1xf32>
      %274 = vector.multi_reduction <maximumf>, %273, %cst_72 [1, 2] : vector<1x1x256xf32> to vector<1xf32>
      %275 = vector.shape_cast %274 : vector<1xf32> to vector<1x1x1xf32>
      %276 = vector.extract %275[0, 0, 0] : f32 from vector<1x1x1xf32>
      %277 = vector.broadcast %276 : f32 to vector<32x1xf32>
      %278 = arith.select %272, %277, %237 : vector<32x1xi1>, vector<32x1xf32>
      %c6_i32 = arith.constant 6 : i32
      %279 = arith.addi %32, %c6_i32 : i32
      %280 = vector.shape_cast %278 : vector<32x1xf32> to vector<1x32x1xf32>
      %cst_73 = arith.constant dense<0xFF800000> : vector<1xf32>
      %281 = vector.multi_reduction <maximumf>, %280, %cst_73 [1, 2] : vector<1x32x1xf32> to vector<1xf32>
      %282 = vector.shape_cast %281 : vector<1xf32> to vector<1x1x1xf32>
      %283 = vector.extract %282[0, 0, 0] : f32 from vector<1x1x1xf32>
      %284 = vector.broadcast %283 : f32 to vector<32x1xf32>
      %285 = arith.cmpf oge, %278, %284 : vector<32x1xf32>
      %c1073741824_i32_74 = arith.constant 1073741824 : i32
      %286 = vector.broadcast %c1073741824_i32_74 : i32 to vector<32x1xi32>
      %287 = arith.select %285, %26, %286 : vector<32x1xi1>, vector<32x1xi32>
      %288 = vector.shape_cast %287 : vector<32x1xi32> to vector<1x32x1xi32>
      %cst_75 = arith.constant dense<2147483647> : vector<1xi32>
      %289 = vector.multi_reduction <minsi>, %288, %cst_75 [1, 2] : vector<1x32x1xi32> to vector<1xi32>
      %290 = vector.shape_cast %289 : vector<1xi32> to vector<1x1x1xi32>
      %291 = vector.extract %290[0, 0, 0] : i32 from vector<1x1x1xi32>
      %292 = arith.index_cast %291 : i32 to index
      %c0_76 = arith.constant 0 : index
      %293 = vector.load %arg3[%292, %c0_76] : memref<32x256xf32, #tpu.memory_space<vmem>>, vector<1x256xf32>
      %294 = vector.broadcast %283 : f32 to vector<1x256xf32>
      %295 = arith.cmpf oge, %293, %294 : vector<1x256xf32>
      %c1073741824_i32_77 = arith.constant 1073741824 : i32
      %296 = vector.broadcast %c1073741824_i32_77 : i32 to vector<1x256xi32>
      %297 = arith.select %295, %27, %296 : vector<1x256xi1>, vector<1x256xi32>
      %298 = vector.shape_cast %297 : vector<1x256xi32> to vector<1x1x256xi32>
      %cst_78 = arith.constant dense<2147483647> : vector<1xi32>
      %299 = vector.multi_reduction <minsi>, %298, %cst_78 [1, 2] : vector<1x1x256xi32> to vector<1xi32>
      %300 = vector.shape_cast %299 : vector<1xi32> to vector<1x1x1xi32>
      %301 = vector.extract %300[0, 0, 0] : i32 from vector<1x1x1xi32>
      %c256_i32_79 = arith.constant 256 : i32
      %302 = arith.muli %291, %c256_i32_79 : i32
      %303 = arith.addi %302, %301 : i32
      %304 = arith.index_cast %279 : i32 to index
      %305 = memref.load %arg2[%304] : memref<200xi32, #tpu.memory_space<smem>>
      memref.store %303, %arg2[%304] : memref<200xi32, #tpu.memory_space<smem>>
      %306 = vector.broadcast %301 : i32 to vector<1x256xi32>
      %307 = arith.cmpi eq, %27, %306 : vector<1x256xi32>
      %cst_80 = arith.constant -3.000000e+38 : f32
      %308 = vector.broadcast %cst_80 : f32 to vector<1x256xf32>
      %309 = arith.select %307, %308, %293 : vector<1x256xi1>, vector<1x256xf32>
      %310 = arith.index_cast %291 : i32 to index
      %c0_81 = arith.constant 0 : index
      %311 = vector.load %arg3[%310, %c0_81] : memref<32x256xf32, #tpu.memory_space<vmem>>, vector<1x256xf32>
      tpu.vector_store %arg3[%310, %c0_81], %309 {strides = array<i32>} : memref<32x256xf32, #tpu.memory_space<vmem>>, vector<1x256xf32>,
      %312 = vector.broadcast %291 : i32 to vector<32x1xi32>
      %313 = arith.cmpi eq, %26, %312 : vector<32x1xi32>
      %314 = vector.shape_cast %309 : vector<1x256xf32> to vector<1x1x256xf32>
      %cst_82 = arith.constant dense<0xFF800000> : vector<1xf32>
      %315 = vector.multi_reduction <maximumf>, %314, %cst_82 [1, 2] : vector<1x1x256xf32> to vector<1xf32>
      %316 = vector.shape_cast %315 : vector<1xf32> to vector<1x1x1xf32>
      %317 = vector.extract %316[0, 0, 0] : f32 from vector<1x1x1xf32>
      %318 = vector.broadcast %317 : f32 to vector<32x1xf32>
      %319 = arith.select %313, %318, %278 : vector<32x1xi1>, vector<32x1xf32>
      %c7_i32 = arith.constant 7 : i32
      %320 = arith.addi %32, %c7_i32 : i32
      %321 = vector.shape_cast %319 : vector<32x1xf32> to vector<1x32x1xf32>
      %cst_83 = arith.constant dense<0xFF800000> : vector<1xf32>
      %322 = vector.multi_reduction <maximumf>, %321, %cst_83 [1, 2] : vector<1x32x1xf32> to vector<1xf32>
      %323 = vector.shape_cast %322 : vector<1xf32> to vector<1x1x1xf32>
      %324 = vector.extract %323[0, 0, 0] : f32 from vector<1x1x1xf32>
      %325 = vector.broadcast %324 : f32 to vector<32x1xf32>
      %326 = arith.cmpf oge, %319, %325 : vector<32x1xf32>
      %c1073741824_i32_84 = arith.constant 1073741824 : i32
      %327 = vector.broadcast %c1073741824_i32_84 : i32 to vector<32x1xi32>
      %328 = arith.select %326, %26, %327 : vector<32x1xi1>, vector<32x1xi32>
      %329 = vector.shape_cast %328 : vector<32x1xi32> to vector<1x32x1xi32>
      %cst_85 = arith.constant dense<2147483647> : vector<1xi32>
      %330 = vector.multi_reduction <minsi>, %329, %cst_85 [1, 2] : vector<1x32x1xi32> to vector<1xi32>
      %331 = vector.shape_cast %330 : vector<1xi32> to vector<1x1x1xi32>
      %332 = vector.extract %331[0, 0, 0] : i32 from vector<1x1x1xi32>
      %333 = arith.index_cast %332 : i32 to index
      %c0_86 = arith.constant 0 : index
      %334 = vector.load %arg3[%333, %c0_86] : memref<32x256xf32, #tpu.memory_space<vmem>>, vector<1x256xf32>
      %335 = vector.broadcast %324 : f32 to vector<1x256xf32>
      %336 = arith.cmpf oge, %334, %335 : vector<1x256xf32>
      %c1073741824_i32_87 = arith.constant 1073741824 : i32
      %337 = vector.broadcast %c1073741824_i32_87 : i32 to vector<1x256xi32>
      %338 = arith.select %336, %27, %337 : vector<1x256xi1>, vector<1x256xi32>
      %339 = vector.shape_cast %338 : vector<1x256xi32> to vector<1x1x256xi32>
      %cst_88 = arith.constant dense<2147483647> : vector<1xi32>
      %340 = vector.multi_reduction <minsi>, %339, %cst_88 [1, 2] : vector<1x1x256xi32> to vector<1xi32>
      %341 = vector.shape_cast %340 : vector<1xi32> to vector<1x1x1xi32>
      %342 = vector.extract %341[0, 0, 0] : i32 from vector<1x1x1xi32>
      %c256_i32_89 = arith.constant 256 : i32
      %343 = arith.muli %332, %c256_i32_89 : i32
      %344 = arith.addi %343, %342 : i32
      %345 = arith.index_cast %320 : i32 to index
      %346 = memref.load %arg2[%345] : memref<200xi32, #tpu.memory_space<smem>>
      memref.store %344, %arg2[%345] : memref<200xi32, #tpu.memory_space<smem>>
      %347 = vector.broadcast %342 : i32 to vector<1x256xi32>
      %348 = arith.cmpi eq, %27, %347 : vector<1x256xi32>
      %cst_90 = arith.constant -3.000000e+38 : f32
      %349 = vector.broadcast %cst_90 : f32 to vector<1x256xf32>
      %350 = arith.select %348, %349, %334 : vector<1x256xi1>, vector<1x256xf32>
      %351 = arith.index_cast %332 : i32 to index
      %c0_91 = arith.constant 0 : index
      %352 = vector.load %arg3[%351, %c0_91] : memref<32x256xf32, #tpu.memory_space<vmem>>, vector<1x256xf32>
      tpu.vector_store %arg3[%351, %c0_91], %350 {strides = array<i32>} : memref<32x256xf32, #tpu.memory_space<vmem>>, vector<1x256xf32>,
      %353 = vector.broadcast %332 : i32 to vector<32x1xi32>
      %354 = arith.cmpi eq, %26, %353 : vector<32x1xi32>
      %355 = vector.shape_cast %350 : vector<1x256xf32> to vector<1x1x256xf32>
      %cst_92 = arith.constant dense<0xFF800000> : vector<1xf32>
      %356 = vector.multi_reduction <maximumf>, %355, %cst_92 [1, 2] : vector<1x1x256xf32> to vector<1xf32>
      %357 = vector.shape_cast %356 : vector<1xf32> to vector<1x1x1xf32>
      %358 = vector.extract %357[0, 0, 0] : f32 from vector<1x1x1xf32>
      %359 = vector.broadcast %358 : f32 to vector<32x1xf32>
      %360 = arith.select %354, %359, %319 : vector<32x1xi1>, vector<32x1xf32>
      scf.yield %360 : vector<32x1xf32>
    }
    %c25_i32_11 = arith.constant 25 : i32
    return
  }
}

</mosaic_0001>

<bundles_post_ra>
// kernel: dsrlm_sample_transitives.1
= control target key start
LH: loop header
LB: loop body
LE: loop exit
PB: predicated region body
PF: predicated region fallthrough
CT: control target
= control target key end

     0   :  { %s2305_s0 = inlined_call_operand.vmem [shape: f32[32,256], index: 0, kind: input, shape index: {}]   ;;  %s2306_s1 = inlined_call_operand.vmem [shape: f32[32,256], index: 1, kind: input, shape index: {}]   ;;  %s2307_s2 = inlined_call_operand.vmem [shape: s32[200], index: 2, kind: output, shape index: {}]  }
   0x1   :  { %v16_v0 = vld [vmem:[%s2305_s0 + $0x20] sm:$0xff]  ;;  %v17_v1 = vld [vmem:[%s2305_s0 + $0x28] sm:$0xff] }
   0x2   :  { %v68_v2 = vld [vmem:[%s2306_s1 + $0x20] sm:$0xff]  ;;  %v24_v3 = vmax.f32 %v16_v0, 0.0  ;;  %v25_v4 = vmax.f32 %v17_v1, 0.0  ;;  %v69_v5 = vld [vmem:[%s2306_s1 + $0x28] sm:$0xff] }
   0x3   :  { %1595 = vlog2.f32 %v68_v2  ;;  %v12_v6 = vld [vmem:[%s2305_s0] sm:$0xff]  ;;  %v13_v7 = vld [vmem:[%s2305_s0 + $0x8] sm:$0xff] }
   0x4   :  { %1597 = vlog2.f32 %v69_v5  ;;  %v20_v8 = vmax.f32 %v12_v6, 0.0  ;;  %v64_v9 = vld [vmem:[%s2306_s1] sm:$0xff]  ;;  %v65_v10 = vld [vmem:[%s2306_s1 + $0x8] sm:$0xff]  ;;  %v32_v11 = vmin.f32 %v24_v3, 1.0  ;;  %v21_v12 = vmax.f32 %v13_v7, 0.0 }
   0x5   :  { %1599 = vlog2.f32 %v64_v9  ;;  %v33_v13 = vmin.f32 %v25_v4, 1.0 }
   0x6   :  { %1601 = vlog2.f32 %v65_v10  ;;  %v124_v14 = vmax.f32 %v32_v11, 1e-30  ;;  %v28_v15 = vmin.f32 %v20_v8, 1.0 }
   0x7   :  { %7 = vsyncpa [#allocation4], 0  ;;  %v29_v16 = vmin.f32 %v21_v12, 1.0  ;;  %v70_v17 = vld [vmem:[%s2306_s1 + $0x30] sm:$0xff]  ;;  %v36_v18 = vlaneseq  ;;  %v125_v19 = vmax.f32 %v33_v13, 1e-30 }
   0x8   :  { %v18_v20 = vld [vmem:[%s2305_s0 + $0x30] sm:$0xff]  ;;  %v71_v21 = vld [vmem:[%s2306_s1 + $0x38] sm:$0xff]  ;;  %1603 = vlog2.f32 %v124_v14  ;;  %v120_v22 = vmax.f32 %v28_v15, 1e-30 }
   0x9   :  { %v19_v23 = vld [vmem:[%s2305_s0 + $0x38] sm:$0xff]  ;;  %v121_v25 = vmax.f32 %v29_v16, 1e-30  ;;  %1605 = vlog2.f32 %v70_v17  ;;  %v26_v28 = vmax.f32 %v18_v20, 0.0  ;;  %v1751_v30 = vshrl.u32 %v36_v18, 7  ;;  %v14_v40 = vld [vmem:[%s2305_s0 + $0x10] sm:$0xff] }
   0xa   :  { %1607 = vlog2.f32 %v71_v21  ;;  %v27_v32 = vmax.f32 %v19_v23, 0.0  ;;  %v66_v41 = vld [vmem:[%s2306_s1 + $0x10] sm:$0xff]  ;;  %v1763_v44 = vand.u32 127, %v36_v18  ;;  %v15_v47 = vld [vmem:[%s2305_s0 + $0x18] sm:$0xff]  ;;  %v22_v49 = vmax.f32 %v14_v40, 0.0  ;;  %s1803_s0 = smov 0  }
   0xb   :  { %1609 = vlog2.f32 %v125_v19  ;;  %v34_v39 = vmin.f32 %v26_v28, 1.0  ;;  %v1760_v42 = vadd.s32 16, %v1751_v30  ;;  %v44_v45 = vmul.u32 256, %v1751_v30  ;;  %v67_v48 = vld [vmem:[%s2306_s1 + $0x18] sm:$0xff] }
   0xc   :  { %1611 = vlog2.f32 %v120_v22  ;;  %v35_v43 = vmin.f32 %v27_v32, 1.0  ;;  %v23_v55 = vmax.f32 %v15_v47, 0.0  ;;  %v1774_v57 = vadd.s32 128, %v1763_v44 }
   0xd   :  { %v1596_v24 = vpop.eup %1595  ;;  %1613 = vlog2.f32 %v121_v25  ;;  %v126_v51 = vmax.f32 %v34_v39, 1e-30  ;;  %v46_v53 = vmul.u32 256, %v1760_v42  ;;  %v48_v58 = vadd.s32 %v44_v45, %v1763_v44 }
   0xe   :  { %v1598_v26 = vpop.eup %1597  ;;  %v81_v27 = vmul.f32 0.6931472, %v1596_v24  ;;  %v127_v54 = vmax.f32 %v35_v43, 1e-30  ;;  %v30_v62 = vmin.f32 %v22_v49, 1.0  ;;  %v31_v4 = vmin.f32 %v23_v55, 1.0 }
   0xf   :  { %v1600_v29 = vpop.eup %1599  ;;  %v83_v31 = vmul.f32 0.6931472, %v1598_v26  ;;  %v52_v2 = vadd.s32 %v46_v53, %v1763_v44  ;;  %v53_v6 = vadd.s32 %v46_v53, %v1774_v57  ;;  %vm56_vm0 = vcmp.lt.s32.totalorder %v48_v58, 8000 }
  0x10   :  { %v92_v33 = vsub.f32 0.0, %v81_v27  ;;  %v73_v34 = vmul.f32 0.6931472, %v1600_v29  ;;  %v1602_v35 = vpop.eup %1601  ;;  %v1780_v7 = vadd.s32 24, %v1751_v30  ;;  %v122_v11 = vmax.f32 %v30_v62, 1e-30 }
  0x11   :  { %v93_v36 = vsub.f32 0.0, %v83_v31  ;;  %v75_v37 = vmul.f32 0.6931472, %v1602_v35  ;;  %v49_v15 = vadd.s32 %v44_v45, %v1774_v57  ;;  %vm60_vm1 = vcmp.lt.s32.totalorder %v52_v2, 8000 }
  0x12   :  { %1615 = vlog2.f32 %v92_v33  ;;  %v88_v38 = vsub.f32 0.0, %v73_v34  ;;  %v1604_v50 = vpop.eup %1603  ;;  %v123_v21 = vmax.f32 %v31_v4, 1e-30  ;;  %vm61_vm2 = vcmp.lt.s32.totalorder %v53_v6, 8000 }
  0x13   :  { %1617 = vlog2.f32 %v93_v36  ;;  %v89_v46 = vsub.f32 0.0, %v75_v37  ;;  %v1606_v52 = vpop.eup %1605  ;;  %v137_v10 = vmul.f32 0.6931472, %v1604_v50  ;;  %v47_v24 = vmul.u32 256, %v1780_v7 }
  0x14   :  { %1619 = vlog2.f32 %v88_v38  ;;  %v1608_v56 = vpop.eup %1607  ;;  %v85_v59 = vmul.f32 0.6931472, %v1606_v52  ;;  %vm57_vm3 = vcmp.lt.s32.totalorder %v49_v15, 8000  ;;  %v1789_v49 = vadd.s32 8, %v1751_v30 }
  0x15   :  { %1621 = vlog2.f32 %v66_v41  ;;  %v1610_v60 = vpop.eup %1609  ;;  %v87_v61 = vmul.f32 0.6931472, %v1608_v56  ;;  %v55_v52 = vadd.s32 %v47_v24, %v1774_v57 }
  0x16   :  { %1623 = vlog2.f32 %v89_v46  ;;  %v1612_v63 = vpop.eup %1611  ;;  %v94_v0 = vsub.f32 0.0, %v85_v59  ;;  %v139_v14 = vmul.f32 0.6931472, %v1610_v60 }
  0x17   :  { %1625 = vlog2.f32 %v67_v48  ;;  %v1614_v1 = vpop.eup %1613  ;;  %v95_v3 = vsub.f32 0.0, %v87_v61  ;;  %v129_v16 = vmul.f32 0.6931472, %v1612_v63  ;;  %v54_v48 = vadd.s32 %v47_v24, %v1763_v44 }
  0x18   :  { %1627 = vlog2.f32 %v126_v51  ;;  %v131_v31 = vmul.f32 0.6931472, %v1614_v1  ;;  %v45_v61 = vmul.u32 256, %v1789_v49  ;;  %vm63_vm5 = vcmp.lt.s32.totalorder %v55_v52, 8000 }
  0x19   :  { %1629 = vlog2.f32 %v127_v54  ;;  %vm62_vm4 = vcmp.lt.s32.totalorder %v54_v48, 8000 }
  0x1a   :  { %1631 = vlog2.f32 %v94_v0 }
  0x1b   :  { %1633 = vlog2.f32 %v95_v3 }
  0x1c   :  { %v1616_v5 = vpop.eup %1615  ;;  %1635 = vlog2.f32 %v122_v11  ;;  %v51_v11 = vadd.s32 %v45_v61, %v1774_v57 }
  0x1d   :  { %v1618_v8 = vpop.eup %1617  ;;  %v105_v9 = vmul.f32 0.6931472, %v1616_v5  ;;  %1637 = vlog2.f32 %v123_v21  ;;  %v50_v5 = vadd.s32 %v45_v61, %v1763_v44 }
  0x1e   :  { %v1620_v12 = vpop.eup %1619  ;;  %v107_v13 = vmul.f32 0.6931472, %v1618_v8  ;;  %vm59_vm7 = vcmp.lt.s32.totalorder %v51_v11, 8000 }
  0x1f   :  { %v1622_v17 = vpop.eup %1621  ;;  %v116_v19 = vsub.f32 0.0, %v105_v9  ;;  %v97_v20 = vmul.f32 0.6931472, %v1620_v12  ;;  %vm58_vm6 = vcmp.lt.s32.totalorder %v50_v5, 8000 }
  0x20   :  { %v1624_v22 = vpop.eup %1623  ;;  %v117_v23 = vsub.f32 0.0, %v107_v13  ;;  %v77_v25 = vmul.f32 0.6931472, %v1622_v17 }
  0x21   :  { %v1626_v26 = vpop.eup %1625  ;;  %v148_v27 = vadd.f32 %v137_v10, %v116_v19  ;;  %v99_v28 = vmul.f32 0.6931472, %v1624_v22  ;;  %v112_v29 = vsub.f32 0.0, %v97_v20 }
  0x22   :  { %v149_v32 = vadd.f32 %v139_v14, %v117_v23  ;;  %v79_v33 = vmul.f32 0.6931472, %v1626_v26  ;;  %v90_v34 = vsub.f32 0.0, %v77_v25  ;;  %v1628_v38 = vpop.eup %1627 }
  0x23   :  { %v156_v35 = vsel %vm60_vm1, %v148_v27, -3e+38  ;;  %v113_v36 = vsub.f32 0.0, %v99_v28  ;;  %v144_v37 = vadd.f32 %v129_v16, %v112_v29  ;;  %v1630_v41 = vpop.eup %1629  ;;  %v141_v54 = vmul.f32 0.6931472, %v1628_v38 }
  0x24   :  { %v157_v39 = vsel %vm61_vm2, %v149_v32, -3e+38  ;;  %164 = vst [vmem:[#allocation2 + $0x20] sm:$0xff] %v156_v35  ;;  %v91_v40 = vsub.f32 0.0, %v79_v33  ;;  %1639 = vlog2.f32 %v90_v34  ;;  %v1632_v47 = vpop.eup %1631  ;;  %v143_v58 = vmul.f32 0.6931472, %v1630_v41 }
  0x25   :  { %165 = vst [vmem:[#allocation2 + $0x28] sm:$0xff] %v157_v39  ;;  %v174_v43 = vmax.f32 %v156_v35, %v157_v39  ;;  %v145_v45 = vadd.f32 %v131_v31, %v113_v36  ;;  %v152_v46 = vsel %vm56_vm0, %v144_v37, -3e+38  ;;  %v1634_v50 = vpop.eup %1633  ;;  %v109_v53 = vmul.f32 0.6931472, %v1632_v47 }
  0x26   :  { %160 = vst [vmem:[#allocation2] sm:$0xff] %v152_v46  ;;  %1641 = vlog2.f32 %v91_v40  ;;  %v111_v56 = vmul.f32 0.6931472, %v1634_v50  ;;  %v1636_v63 = vpop.eup %1635 }
  0x27   :  { %175 = vmax.xlane.f32.xlu1 %v174_v43  ;;  %v153_v51 = vsel %vm57_vm3, %v145_v45, -3e+38  ;;  %v118_v59 = vsub.f32 0.0, %v109_v53  ;;  %v1638_v1 = vpop.eup %1637  ;;  %v133_v9 = vmul.f32 0.6931472, %v1636_v63 }
  0x28   :  { %161 = vst [vmem:[#allocation2 + $0x8] sm:$0xff] %v153_v51  ;;  %v168_v55 = vmax.f32 %v152_v46, %v153_v51  ;;  %v119_v60 = vsub.f32 0.0, %v111_v56  ;;  %v135_v14 = vmul.f32 0.6931472, %v1638_v1 }
  0x29   :  { %v150_v62 = vadd.f32 %v141_v54, %v118_v59 }
  0x2a   :  { %169 = vmax.xlane.f32.xlu0 %v168_v55  ;;  %v151_v0 = vadd.f32 %v143_v58, %v119_v60 }
  0x2b   :  { %v158_v2 = vsel %vm62_vm4, %v150_v62, -3e+38 }
  0x2c   :  { %v159_v4 = vsel %vm63_vm5, %v151_v0, -3e+38  ;;  %166 = vst [vmem:[#allocation2 + $0x30] sm:$0xff] %v158_v2 }
  0x2d   :  { %167 = vst [vmem:[#allocation2 + $0x38] sm:$0xff] %v159_v4  ;;  %v177_v6 = vmax.f32 %v158_v2, %v159_v4 }
  0x2e   :  { %v1640_v3 = vpop.eup %1639 }
  0x2f   :  { %v101_v8 = vmul.f32 0.6931472, %v1640_v3  ;;  %178 = vmax.xlane.f32.xlu1 %v177_v6 }
  0x30   :  { %v1642_v10 = vpop.eup %1641 }
  0x31   :  { %v103_v12 = vmul.f32 0.6931472, %v1642_v10  ;;  %v114_v13 = vsub.f32 0.0, %v101_v8 }
  0x33   :  { %v115_v15 = vsub.f32 0.0, %v103_v12  ;;  %v146_v16 = vadd.f32 %v133_v9, %v114_v13 }
  0x35   :  { %v147_v17 = vadd.f32 %v135_v14, %v115_v15  ;;  %v154_v19 = vsel %vm58_vm6, %v146_v16, -3e+38 }
  0x36   :  { %162 = vst [vmem:[#allocation2 + $0x10] sm:$0xff] %v154_v19 }
  0x37   :  { %v155_v20 = vsel %vm59_vm7, %v147_v17, -3e+38 }
  0x38   :  { %163 = vst [vmem:[#allocation2 + $0x18] sm:$0xff] %v155_v20  ;;  %v171_v21 = vmax.f32 %v154_v19, %v155_v20 }
  0x3a   :  { %172 = vmax.xlane.f32.xlu0 %v171_v21 }
  0xb4   :  { %v176_v22 = vpop.xlane.xlu1 %175  }
  0xb7   :  { %v170_v23 = vpop.xlane.xlu0 %169  }
  0xbc   :  { %v179_v24 = vpop.xlane.xlu1 %178  }
  0xc7   :  { %v173_v25 = vpop.xlane.xlu0 %172  }
  0xc8 LB: > { %v191_v26 = vmax.f32 %v1691_v23, %v1687_v25  ;;  %v192_v27 = vmax.f32 %v1683_v22, %v1679_v24  ;;  %v1697_v53 = vmov 1966171168   ;;  %v236_v56 = vcombine.low %v1763_v44, %v1774_v57  ;;  %s1449_s19 = sshll.u32 %s1695_s0, 3  ;;  %s185_s0 = sadd.s32 1, %s1695_s0   ;;  %s1695_s0 = sphi %s1803_s0, %s185_s0   ;;  %v1691_v23 = vphi %v170_v23, %v1366_v23   ;;  %v1687_v25 = vphi %v173_v25, %v1367_v25   ;;  %v1683_v22 = vphi %v176_v22, %v1368_v22   ;;  %v1679_v24 = vphi %v179_v24, %v1369_v24  }
  0xc9   : > { %v238_v54 = vunpack.c.l.s4 %v1697_v53  ;;  %v1851_v62 = vsub.s32 0, %v1751_v30  ;;  %v1854_v63 = vsub.s32 1, %v1751_v30  ;;  %vm260_vm3 = vcmask 1040384   ;;  %s1865_s23 = scalar_lea.smem [#allocation3], %s1449_s19  ;;  %p182_p0 = scmp.ge.s32.totalorder %s185_s0, 25  }
  0xca   : > { %v193_v28 = vmax.f32 %v191_v26, %v192_v27  ;;  %s1395_s4 = scalar_lea.smem %s1865_s23, 1 [#allocation3] }
  0xcb   : > { %v239_v55 = vunpack.c.0.s8 %v238_v54 }
  0xcc   : > { %v194_v29 = vrot.slane %v193_v28, 4 }
  0xcd   : > { %v1835_v58 = vsub.s32 %v239_v55, %v1751_v30 }
  0xce   : > { %v195_v31 = vmax.f32 %v193_v28, %v194_v29 }
  0xcf   : > { %v243_v59 = vrot.slane %v236_v56, %v1835_v58 }
  0xd0   : > { %v196_v32 = vrot.slane %v195_v31, 2 }
  0xd1   : > { %v1845_v60 = vrot.slane %v243_v59, %v1835_v58 }
  0xd2   : > { %v197_v33 = vmax.f32 %v195_v31, %v196_v32 }
  0xd4   : > { %v198_v34 = vrot.slane %v197_v33, 1 }
  0xd6   : > { %v199_v35 = vmax.f32 %v197_v33, %v198_v34 }
  0xd8   : > { %1489 = vpush %v199_v35 }
 0x109   : > { %s1490_s1 = spop %1489 }
 0x10a   : > { %v201_v36 = vstv %s1490_s1 }
 0x10b   : > { %vm202_vm8 = vcmp.ge.f32.partialorder %v1691_v23, %v201_v36  ;;  %vm203_vm9 = vcmp.ge.f32.partialorder %v1687_v25, %v201_v36  ;;  %vm204_vm10 = vcmp.ge.f32.partialorder %v1683_v22, %v201_v36  ;;  %vm205_vm11 = vcmp.ge.f32.partialorder %v1679_v24, %v201_v36 }
 0x10c   : > { %v206_v37 = vsel %vm202_vm8, %v1751_v30, 1073741824  ;;  %v207_v38 = vsel %vm203_vm9, %v1789_v49, 1073741824  ;;  %v208_v39 = vsel %vm204_vm10, %v1760_v42, 1073741824  ;;  %v209_v40 = vsel %vm205_vm11, %v1780_v7, 1073741824 }
 0x10d   : > { %vm210_vm12 = vcmp.lt.s32.totalorder %v206_v37, %v207_v38  ;;  %vm212_vm13 = vcmp.lt.s32.totalorder %v208_v39, %v209_v40  ;;  %vm1874_vm11 = vcmp.lt.s32.totalorder %v36_v18, 256 }
 0x10e   : > { %v211_v41 = vsel %vm210_vm12, %v206_v37, %v207_v38  ;;  %v213_v43 = vsel %vm212_vm13, %v208_v39, %v209_v40 }
 0x10f   : > { %vm214_vm14 = vcmp.lt.s32.totalorder %v211_v41, %v213_v43 }
 0x110   : > { %v215_v45 = vsel %vm214_vm14, %v211_v41, %v213_v43 }
 0x111   : > { %v216_v46 = vrot.slane %v215_v45, 4 }
 0x113   : > { %vm217_vm15 = vcmp.lt.s32.totalorder %v215_v45, %v216_v46 }
 0x114   : > { %v218_v47 = vsel %vm217_vm15, %v215_v45, %v216_v46 }
 0x115   : > { %v219_v48 = vrot.slane %v218_v47, 2 }
 0x117   : > { %vm220_vm0 = vcmp.lt.s32.totalorder %v218_v47, %v219_v48 }
 0x118   : > { %v221_v50 = vsel %vm220_vm0, %v218_v47, %v219_v48 }
 0x119   : > { %v222_v51 = vrot.slane %v221_v50, 1 }
 0x11b   : > { %vm223_vm1 = vcmp.lt.s32.totalorder %v221_v50, %v222_v51 }
 0x11c   : > { %v224_v52 = vsel %vm223_vm1, %v221_v50, %v222_v51 }
 0x11d   : > { %1491 = vpush %v224_v52 }
 0x14e   : > { %s1838_s13 = spop %1491 }
 0x14f   : > { %s226_s14 = sshra.s32 %s1838_s13, 3  ;;  %s229_s15 = sand.u32 7, %s1838_s13  ;;  %v333_v52 = vstv %s1838_s13 }
 0x150   : > { %s1481_s16 = sshll.u32 %s226_s14, 4  ;;  %s1452_s21 = sshll.u32 %s1838_s13, 8  ;;  %vm334_vm12 = vcmp.eq.s32.totalorder %v1751_v30, %v333_v52  ;;  %vm335_vm13 = vcmp.eq.s32.totalorder %v1789_v49, %v333_v52  ;;  %vm336_vm14 = vcmp.eq.s32.totalorder %v1760_v42, %v333_v52  ;;  %vm337_vm15 = vcmp.eq.s32.totalorder %v1780_v7, %v333_v52 }
 0x151   : > { %s1842_s17 = sadd.s32 %s1481_s16, %s229_s15  ;;  %s1401_s15 = scalar_lea.smem %s1865_s23, 2 [#allocation3] }
 0x152   : > { %s233_s18 = scalar_lea.vmem [#allocation2], %s1842_s17 }
 0x153   : > { %v234_v61 = vld [vmem:[%s233_s18] ss:$8 sm:$0x3] }
 0x154   : > { %vm235_vm2 = vcmp.ge.f32.partialorder %v234_v61, %v201_v36  ;;  %v300_v31 = vrot.slane %v234_v61, %v1851_v62  ;;  %v304_v32 = vrot.slane %v234_v61, %v1854_v63 }
 0x155   : > { %v251_v0 = vsel %vm235_vm2, %v1845_v60, 1073741824 }
 0x156   : > { %v255_v1 = vrot.slane %v251_v0, %v1851_v62  ;;  %v259_v2 = vrot.slane %v251_v0, %v1854_v63 }
 0x158   : > { %v261_v3 = vsel %vm260_vm3, %v255_v1, 2147483647  ;;  %v262_v4 = vsel %vm260_vm3, %v259_v2, 2147483647 }
 0x159   : > { %vm263_vm4 = vcmp.lt.s32.totalorder %v261_v3, %v262_v4 }
 0x15a   : > { %v264_v5 = vsel %vm263_vm4, %v261_v3, %v262_v4 }
 0x15b   : > { %v266_v6 = vshra.s32 %v264_v5, 16  ;;  %v265_v9 = vand.u32 65535, %v264_v5 }
 0x15d   : > { %v268_v8 = vcvt.s32.f32 %v266_v6  ;;  %v267_v11 = vcvt.s32.f32 %v265_v9 }
 0x15f   : > { %269 = vmin.xlane.f32.xlu0 %v268_v8 }
 0x1ec   : > { %v270_v10 = vpop.xlane.xlu0 %269 }
 0x1ed   : > { %vm271_vm5 = vcmp.eq.f32.partialorder %v268_v8, %v270_v10  ;;  %v276_v13 = vcvt.f32.s32 %v270_v10 }
 0x1ee   : > { %v272_v12 = vsel %vm271_vm5, %v267_v11, inf }
 0x1ef   : > { %273 = vmin.xlane.f32.xlu0 %v272_v12  ;;  %v277_v15 = vshll.u32 %v276_v13, 16 }
 0x27c   : > { %v274_v14 = vpop.xlane.xlu0 %273 }
 0x27d   : > { %v275_v16 = vcvt.f32.s32 %v274_v14 }
 0x27f   : > { %v278_v17 = vadd.s32 %v277_v15, %v275_v16 }
 0x281   : > { %v279_v19 = vrot.slane %v278_v17, 4 }
 0x283   : > { %vm280_vm6 = vcmp.lt.s32.totalorder %v278_v17, %v279_v19 }
 0x284   : > { %v281_v20 = vsel %vm280_vm6, %v278_v17, %v279_v19 }
 0x285   : > { %v282_v21 = vrot.slane %v281_v20, 2 }
 0x287   : > { %vm283_vm7 = vcmp.lt.s32.totalorder %v281_v20, %v282_v21 }
 0x288   : > { %v284_v26 = vsel %vm283_vm7, %v281_v20, %v282_v21 }
 0x289   : > { %v285_v27 = vrot.slane %v284_v26, 1 }
 0x28b   : > { %vm286_vm8 = vcmp.lt.s32.totalorder %v284_v26, %v285_v27 }
 0x28c   : > { %v287_v28 = vsel %vm286_vm8, %v284_v26, %v285_v27 }
 0x28d   : > { %1493 = vpush %v287_v28 }
 0x2be   : > { %s1494_s20 = spop %1493 }
 0x2bf   : > { %s290_s22 = sadd.s32 %s1494_s20, %s1452_s21  ;;  %v293_v29 = vstv %s1494_s20 }
 0x2c0   : > { %292 = sst [smem:[%s1865_s23]] %s290_s22  ;;  %vm294_vm9 = vcmp.eq.s32.totalorder %v1763_v44, %v293_v29  ;;  %vm295_vm10 = vcmp.eq.s32.totalorder %v1774_v57, %v293_v29 }
 0x2c1   : > { %v307_v33 = vsel %vm294_vm9, -3e+38, %v300_v31  ;;  %v308_v34 = vsel %vm295_vm10, -3e+38, %v304_v32 }
 0x2c2   : > { %v338_v35 = vsel %vm260_vm3, %v307_v33, -inf  ;;  %v339_v36 = vsel %vm260_vm3, %v308_v34, -inf  ;;  %v311_v37 = vcombine.low %v307_v33, %v308_v34 }
 0x2c3   : > { %v340_v38 = vmax.f32 %v338_v35, %v339_v36 }
 0x2c4   : > { %v318_v39 = vrot.slane %v311_v37, %v1835_v58 }
 0x2c5   : > { %341 = vmax.xlane.f32.xlu1 %v340_v38 }
 0x2c6   : > { %v325_v41 = vrot.slane %v318_v39, %v1835_v58 }
 0x2c8   : > { %331 = vst.msk [vmem:[%s233_s18] ss:$8 sm:$0x3] %vm1874_vm11, %v325_v41 }
 0x352   : > { %v342_v43 = vpop.xlane.xlu1 %341 }
 0x353   : > { %v343_v45 = vrot.slane %v342_v43, 4 }
 0x355   : > { %v344_v46 = vmax.f32 %v342_v43, %v343_v45 }
 0x357   : > { %v345_v47 = vrot.slane %v344_v46, 2 }
 0x359   : > { %v346_v48 = vmax.f32 %v344_v46, %v345_v47 }
 0x35b   : > { %v347_v50 = vrot.slane %v346_v48, 1 }
 0x35d   : > { %v348_v51 = vmax.f32 %v346_v48, %v347_v50 }
 0x35f   : > { %1495 = vpush %v348_v51 }
 0x390   : > { %s1496_s24 = spop %1495 }
 0x391   : > { %v350_v53 = vstv %s1496_s24 }
 0x392   : > { %v1889_v54 = vsel %vm334_vm12, %v350_v53, %v1691_v23  ;;  %v1892_v55 = vsel %vm335_vm13, %v350_v53, %v1687_v25  ;;  %v1895_v56 = vsel %vm336_vm14, %v350_v53, %v1683_v22  ;;  %v1898_v59 = vsel %vm337_vm15, %v350_v53, %v1679_v24 }
 0x393   : > { %v356_v61 = vmax.f32 %v1889_v54, %v1892_v55  ;;  %v357_v0 = vmax.f32 %v1895_v56, %v1898_v59 }
 0x395   : > { %v358_v1 = vmax.f32 %v356_v61, %v357_v0 }
 0x397   : > { %v359_v2 = vrot.slane %v358_v1, 4 }
 0x399   : > { %v360_v3 = vmax.f32 %v358_v1, %v359_v2 }
 0x39b   : > { %v361_v23 = vrot.slane %v360_v3, 2 }
 0x39d   : > { %v362_v4 = vmax.f32 %v360_v3, %v361_v23 }
 0x39f   : > { %v363_v5 = vrot.slane %v362_v4, 1 }
 0x3a1   : > { %v364_v25 = vmax.f32 %v362_v4, %v363_v5 }
 0x3a3   : > { %1497 = vpush %v364_v25 }
 0x3d4   : > { %s1498_s25 = spop %1497 }
 0x3d5   : > { %v366_v22 = vstv %s1498_s25 }
 0x3d6   : > { %vm367_vm0 = vcmp.ge.f32.partialorder %v1889_v54, %v366_v22  ;;  %vm368_vm1 = vcmp.ge.f32.partialorder %v1892_v55, %v366_v22  ;;  %vm369_vm2 = vcmp.ge.f32.partialorder %v1895_v56, %v366_v22  ;;  %vm370_vm4 = vcmp.ge.f32.partialorder %v1898_v59, %v366_v22 }
 0x3d7   : > { %v371_v24 = vsel %vm367_vm0, %v1751_v30, 1073741824  ;;  %v372_v6 = vsel %vm368_vm1, %v1789_v49, 1073741824  ;;  %v373_v8 = vsel %vm369_vm2, %v1760_v42, 1073741824  ;;  %v374_v9 = vsel %vm370_vm4, %v1780_v7, 1073741824 }
 0x3d8   : > { %vm375_vm5 = vcmp.lt.s32.totalorder %v371_v24, %v372_v6  ;;  %vm377_vm6 = vcmp.lt.s32.totalorder %v373_v8, %v374_v9 }
 0x3d9   : > { %v376_v10 = vsel %vm375_vm5, %v371_v24, %v372_v6  ;;  %v378_v11 = vsel %vm377_vm6, %v373_v8, %v374_v9 }
 0x3da   : > { %vm379_vm7 = vcmp.lt.s32.totalorder %v376_v10, %v378_v11 }
 0x3db   : > { %v380_v12 = vsel %vm379_vm7, %v376_v10, %v378_v11 }
 0x3dc   : > { %v381_v13 = vrot.slane %v380_v12, 4 }
 0x3de   : > { %vm382_vm8 = vcmp.lt.s32.totalorder %v380_v12, %v381_v13 }
 0x3df   : > { %v383_v14 = vsel %vm382_vm8, %v380_v12, %v381_v13 }
 0x3e0   : > { %v384_v15 = vrot.slane %v383_v14, 2 }
 0x3e2   : > { %vm385_vm9 = vcmp.lt.s32.totalorder %v383_v14, %v384_v15 }
 0x3e3   : > { %v386_v16 = vsel %vm385_vm9, %v383_v14, %v384_v15 }
 0x3e4   : > { %v387_v17 = vrot.slane %v386_v16, 1 }
 0x3e6   : > { %vm388_vm10 = vcmp.lt.s32.totalorder %v386_v16, %v387_v17 }
 0x3e7   : > { %v389_v19 = vsel %vm388_vm10, %v386_v16, %v387_v17 }
 0x3e8   : > { %1499 = vpush %v389_v19 }
 0x419   : > { %s1912_s26 = spop %1499 }
 0x41a   : > { %s391_s27 = sshra.s32 %s1912_s26, 3  ;;  %s394_s28 = sand.u32 7, %s1912_s26  ;;  %v478_v13 = vstv %s1912_s26 }
 0x41b   : > { %s1482_s29 = sshll.u32 %s391_s27, 4  ;;  %s1455_s6 = sshll.u32 %s1912_s26, 8  ;;  %vm479_vm5 = vcmp.eq.s32.totalorder %v1751_v30, %v478_v13  ;;  %vm480_vm6 = vcmp.eq.s32.totalorder %v1789_v49, %v478_v13  ;;  %vm481_vm7 = vcmp.eq.s32.totalorder %v1760_v42, %v478_v13  ;;  %vm482_vm8 = vcmp.eq.s32.totalorder %v1780_v7, %v478_v13 }
 0x41c   : > { %s1916_s30 = sadd.s32 %s1482_s29, %s394_s28  ;;  %s1407_s28 = scalar_lea.smem %s1865_s23, 3 [#allocation3] }
 0x41d   : > { %s398_s3 = scalar_lea.vmem [#allocation2], %s1916_s30 }
 0x41e   : > { %v399_v20 = vld [vmem:[%s398_s3] ss:$8 sm:$0x3] }
 0x41f   : > { %vm400_vm12 = vcmp.ge.f32.partialorder %v399_v20, %v366_v22  ;;  %v449_v61 = vrot.slane %v399_v20, %v1851_v62  ;;  %v453_v0 = vrot.slane %v399_v20, %v1854_v63 }
 0x420   : > { %v401_v21 = vsel %vm400_vm12, %v1845_v60, 1073741824 }
 0x421   : > { %v405_v26 = vrot.slane %v401_v21, %v1851_v62  ;;  %v409_v27 = vrot.slane %v401_v21, %v1854_v63 }
 0x423   : > { %v410_v28 = vsel %vm260_vm3, %v405_v26, 2147483647  ;;  %v411_v29 = vsel %vm260_vm3, %v409_v27, 2147483647 }
 0x424   : > { %vm412_vm13 = vcmp.lt.s32.totalorder %v410_v28, %v411_v29 }
 0x425   : > { %v413_v31 = vsel %vm412_vm13, %v410_v28, %v411_v29 }
 0x426   : > { %v415_v32 = vshra.s32 %v413_v31, 16  ;;  %v414_v34 = vand.u32 65535, %v413_v31 }
 0x428   : > { %v417_v33 = vcvt.s32.f32 %v415_v32  ;;  %v416_v36 = vcvt.s32.f32 %v414_v34 }
 0x42a   : > { %418 = vmin.xlane.f32.xlu1 %v417_v33 }
 0x4b7   : > { %v419_v35 = vpop.xlane.xlu1 %418 }
 0x4b8   : > { %vm420_vm14 = vcmp.eq.f32.partialorder %v417_v33, %v419_v35  ;;  %v425_v38 = vcvt.f32.s32 %v419_v35 }
 0x4b9   : > { %v421_v37 = vsel %vm420_vm14, %v416_v36, inf }
 0x4ba   : > { %422 = vmin.xlane.f32.xlu0 %v421_v37  ;;  %v426_v41 = vshll.u32 %v425_v38, 16 }
 0x547   : > { %v423_v39 = vpop.xlane.xlu0 %422 }
 0x548   : > { %v424_v43 = vcvt.f32.s32 %v423_v39 }
 0x54a   : > { %v427_v45 = vadd.s32 %v426_v41, %v424_v43 }
 0x54c   : > { %v428_v46 = vrot.slane %v427_v45, 4 }
 0x54e   : > { %vm429_vm15 = vcmp.lt.s32.totalorder %v427_v45, %v428_v46 }
 0x54f   : > { %v430_v47 = vsel %vm429_vm15, %v427_v45, %v428_v46 }
 0x550   : > { %v431_v48 = vrot.slane %v430_v47, 2 }
 0x552   : > { %vm432_vm0 = vcmp.lt.s32.totalorder %v430_v47, %v431_v48 }
 0x553   : > { %v433_v50 = vsel %vm432_vm0, %v430_v47, %v431_v48 }
 0x554   : > { %v434_v51 = vrot.slane %v433_v50, 1 }
 0x556   : > { %vm435_vm1 = vcmp.lt.s32.totalorder %v433_v50, %v434_v51 }
 0x557   : > { %v436_v52 = vsel %vm435_vm1, %v433_v50, %v434_v51 }
 0x558   : > { %1501 = vpush %v436_v52 }
 0x589   : > { %s1502_s5 = spop %1501 }
 0x58a   : > { %s439_s7 = sadd.s32 %s1502_s5, %s1455_s6  ;;  %v442_v53 = vstv %s1502_s5 }
 0x58b   : > { %441 = sst [smem:[%s1395_s4]] %s439_s7  ;;  %vm443_vm2 = vcmp.eq.s32.totalorder %v1763_v44, %v442_v53  ;;  %vm444_vm4 = vcmp.eq.s32.totalorder %v1774_v57, %v442_v53 }
 0x58c   : > { %v456_v1 = vsel %vm443_vm2, -3e+38, %v449_v61  ;;  %v457_v2 = vsel %vm444_vm4, -3e+38, %v453_v0 }
 0x58d   : > { %v483_v3 = vsel %vm260_vm3, %v456_v1, -inf  ;;  %v484_v23 = vsel %vm260_vm3, %v457_v2, -inf  ;;  %v460_v4 = vcombine.low %v456_v1, %v457_v2 }
 0x58e   : > { %v485_v5 = vmax.f32 %v483_v3, %v484_v23 }
 0x58f   : > { %v467_v25 = vrot.slane %v460_v4, %v1835_v58 }
 0x590   : > { %486 = vmax.xlane.f32.xlu1 %v485_v5 }
 0x591   : > { %v474_v22 = vrot.slane %v467_v25, %v1835_v58 }
 0x593   : > { %476 = vst.msk [vmem:[%s398_s3] ss:$8 sm:$0x3] %vm1874_vm11, %v474_v22 }
 0x61d   : > { %v487_v24 = vpop.xlane.xlu1 %486 }
 0x61e   : > { %v488_v6 = vrot.slane %v487_v24, 4 }
 0x620   : > { %v489_v8 = vmax.f32 %v487_v24, %v488_v6 }
 0x622   : > { %v490_v9 = vrot.slane %v489_v8, 2 }
 0x624   : > { %v491_v10 = vmax.f32 %v489_v8, %v490_v9 }
 0x626   : > { %v492_v11 = vrot.slane %v491_v10, 1 }
 0x628   : > { %v493_v12 = vmax.f32 %v491_v10, %v492_v11 }
 0x62a   : > { %1503 = vpush %v493_v12 }
 0x65b   : > { %s1504_s8 = spop %1503 }
 0x65c   : > { %v495_v14 = vstv %s1504_s8 }
 0x65d   : > { %v1946_v15 = vsel %vm479_vm5, %v495_v14, %v1889_v54  ;;  %v1949_v16 = vsel %vm480_vm6, %v495_v14, %v1892_v55  ;;  %v1952_v17 = vsel %vm481_vm7, %v495_v14, %v1895_v56  ;;  %v1955_v19 = vsel %vm482_vm8, %v495_v14, %v1898_v59 }
 0x65e   : > { %v501_v20 = vmax.f32 %v1946_v15, %v1949_v16  ;;  %v502_v21 = vmax.f32 %v1952_v17, %v1955_v19 }
 0x660   : > { %v503_v26 = vmax.f32 %v501_v20, %v502_v21 }
 0x662   : > { %v504_v27 = vrot.slane %v503_v26, 4 }
 0x664   : > { %v505_v28 = vmax.f32 %v503_v26, %v504_v27 }
 0x666   : > { %v506_v54 = vrot.slane %v505_v28, 2 }
 0x668   : > { %v507_v29 = vmax.f32 %v505_v28, %v506_v54 }
 0x66a   : > { %v508_v31 = vrot.slane %v507_v29, 1 }
 0x66c   : > { %v509_v55 = vmax.f32 %v507_v29, %v508_v31 }
 0x66e   : > { %1505 = vpush %v509_v55 }
 0x69f   : > { %s1506_s9 = spop %1505 }
 0x6a0   : > { %v511_v56 = vstv %s1506_s9 }
 0x6a1   : > { %vm512_vm9 = vcmp.ge.f32.partialorder %v1946_v15, %v511_v56  ;;  %vm513_vm10 = vcmp.ge.f32.partialorder %v1949_v16, %v511_v56  ;;  %vm514_vm12 = vcmp.ge.f32.partialorder %v1952_v17, %v511_v56  ;;  %vm515_vm13 = vcmp.ge.f32.partialorder %v1955_v19, %v511_v56 }
 0x6a2   : > { %v516_v59 = vsel %vm512_vm9, %v1751_v30, 1073741824  ;;  %v517_v32 = vsel %vm513_vm10, %v1789_v49, 1073741824  ;;  %v518_v33 = vsel %vm514_vm12, %v1760_v42, 1073741824  ;;  %v519_v34 = vsel %vm515_vm13, %v1780_v7, 1073741824 }
 0x6a3   : > { %vm520_vm14 = vcmp.lt.s32.totalorder %v516_v59, %v517_v32  ;;  %vm522_vm15 = vcmp.lt.s32.totalorder %v518_v33, %v519_v34 }
 0x6a4   : > { %v521_v35 = vsel %vm520_vm14, %v516_v59, %v517_v32  ;;  %v523_v36 = vsel %vm522_vm15, %v518_v33, %v519_v34 }
 0x6a5   : > { %vm524_vm0 = vcmp.lt.s32.totalorder %v521_v35, %v523_v36 }
 0x6a6   : > { %v525_v37 = vsel %vm524_vm0, %v521_v35, %v523_v36 }
 0x6a7   : > { %v526_v38 = vrot.slane %v525_v37, 4 }
 0x6a9   : > { %vm527_vm1 = vcmp.lt.s32.totalorder %v525_v37, %v526_v38 }
 0x6aa   : > { %v528_v39 = vsel %vm527_vm1, %v525_v37, %v526_v38 }
 0x6ab   : > { %v529_v41 = vrot.slane %v528_v39, 2 }
 0x6ad   : > { %vm530_vm2 = vcmp.lt.s32.totalorder %v528_v39, %v529_v41 }
 0x6ae   : > { %v531_v43 = vsel %vm530_vm2, %v528_v39, %v529_v41 }
 0x6af   : > { %v532_v45 = vrot.slane %v531_v43, 1 }
 0x6b1   : > { %vm533_vm4 = vcmp.lt.s32.totalorder %v531_v43, %v532_v45 }
 0x6b2   : > { %v534_v46 = vsel %vm533_vm4, %v531_v43, %v532_v45 }
 0x6b3   : > { %1507 = vpush %v534_v46 }
 0x6e4   : > { %s1969_s10 = spop %1507 }
 0x6e5   : > { %s536_s11 = sshra.s32 %s1969_s10, 3  ;;  %s539_s12 = sand.u32 7, %s1969_s10  ;;  %v623_v38 = vstv %s1969_s10 }
 0x6e6   : > { %s1483_s1 = sshll.u32 %s536_s11, 4  ;;  %s1459_s17 = sshll.u32 %s1969_s10, 8  ;;  %vm624_vm14 = vcmp.eq.s32.totalorder %v1751_v30, %v623_v38  ;;  %vm625_vm15 = vcmp.eq.s32.totalorder %v1789_v49, %v623_v38  ;;  %vm626_vm0 = vcmp.eq.s32.totalorder %v1760_v42, %v623_v38  ;;  %vm627_vm1 = vcmp.eq.s32.totalorder %v1780_v7, %v623_v38 }
 0x6e7   : > { %s1973_s13 = sadd.s32 %s1483_s1, %s539_s12  ;;  %s1413_s12 = scalar_lea.smem %s1865_s23, 4 [#allocation3] }
 0x6e8   : > { %s543_s14 = scalar_lea.vmem [#allocation2], %s1973_s13 }
 0x6e9   : > { %v544_v47 = vld [vmem:[%s543_s14] ss:$8 sm:$0x3] }
 0x6ea   : > { %vm545_vm5 = vcmp.ge.f32.partialorder %v544_v47, %v511_v56  ;;  %v594_v20 = vrot.slane %v544_v47, %v1851_v62  ;;  %v598_v21 = vrot.slane %v544_v47, %v1854_v63 }
 0x6eb   : > { %v546_v48 = vsel %vm545_vm5, %v1845_v60, 1073741824 }
 0x6ec   : > { %v550_v50 = vrot.slane %v546_v48, %v1851_v62  ;;  %v554_v51 = vrot.slane %v546_v48, %v1854_v63 }
 0x6ee   : > { %v555_v52 = vsel %vm260_vm3, %v550_v50, 2147483647  ;;  %v556_v53 = vsel %vm260_vm3, %v554_v51, 2147483647 }
 0x6ef   : > { %vm557_vm6 = vcmp.lt.s32.totalorder %v555_v52, %v556_v53 }
 0x6f0   : > { %v558_v61 = vsel %vm557_vm6, %v555_v52, %v556_v53 }
 0x6f1   : > { %v560_v0 = vshra.s32 %v558_v61, 16  ;;  %v559_v2 = vand.u32 65535, %v558_v61 }
 0x6f3   : > { %v562_v1 = vcvt.s32.f32 %v560_v0  ;;  %v561_v23 = vcvt.s32.f32 %v559_v2 }
 0x6f5   : > { %563 = vmin.xlane.f32.xlu0 %v562_v1 }
 0x782   : > { %v564_v3 = vpop.xlane.xlu0 %563 }
 0x783   : > { %vm565_vm7 = vcmp.eq.f32.partialorder %v562_v1, %v564_v3  ;;  %v570_v5 = vcvt.f32.s32 %v564_v3 }
 0x784   : > { %v566_v4 = vsel %vm565_vm7, %v561_v23, inf }
 0x785   : > { %567 = vmin.xlane.f32.xlu1 %v566_v4  ;;  %v571_v22 = vshll.u32 %v570_v5, 16 }
 0x812   : > { %v568_v25 = vpop.xlane.xlu1 %567 }
 0x813   : > { %v569_v24 = vcvt.f32.s32 %v568_v25 }
 0x815   : > { %v572_v6 = vadd.s32 %v571_v22, %v569_v24 }
 0x817   : > { %v573_v8 = vrot.slane %v572_v6, 4 }
 0x819   : > { %vm574_vm8 = vcmp.lt.s32.totalorder %v572_v6, %v573_v8 }
 0x81a   : > { %v575_v9 = vsel %vm574_vm8, %v572_v6, %v573_v8 }
 0x81b   : > { %v576_v10 = vrot.slane %v575_v9, 2 }
 0x81d   : > { %vm577_vm9 = vcmp.lt.s32.totalorder %v575_v9, %v576_v10 }
 0x81e   : > { %v578_v11 = vsel %vm577_vm9, %v575_v9, %v576_v10 }
 0x81f   : > { %v579_v12 = vrot.slane %v578_v11, 1 }
 0x821   : > { %vm580_vm10 = vcmp.lt.s32.totalorder %v578_v11, %v579_v12 }
 0x822   : > { %v581_v13 = vsel %vm580_vm10, %v578_v11, %v579_v12 }
 0x823   : > { %1509 = vpush %v581_v13 }
 0x854   : > { %s1510_s16 = spop %1509 }
 0x855   : > { %s584_s18 = sadd.s32 %s1510_s16, %s1459_s17  ;;  %v587_v14 = vstv %s1510_s16 }
 0x856   : > { %586 = sst [smem:[%s1401_s15]] %s584_s18  ;;  %vm588_vm12 = vcmp.eq.s32.totalorder %v1763_v44, %v587_v14  ;;  %vm589_vm13 = vcmp.eq.s32.totalorder %v1774_v57, %v587_v14 }
 0x857   : > { %v601_v26 = vsel %vm588_vm12, -3e+38, %v594_v20  ;;  %v602_v27 = vsel %vm589_vm13, -3e+38, %v598_v21 }
 0x858   : > { %v628_v28 = vsel %vm260_vm3, %v601_v26, -inf  ;;  %v629_v54 = vsel %vm260_vm3, %v602_v27, -inf  ;;  %v605_v29 = vcombine.low %v601_v26, %v602_v27 }
 0x859   : > { %v630_v31 = vmax.f32 %v628_v28, %v629_v54 }
 0x85a   : > { %v612_v55 = vrot.slane %v605_v29, %v1835_v58 }
 0x85b   : > { %631 = vmax.xlane.f32.xlu0 %v630_v31 }
 0x85c   : > { %v619_v56 = vrot.slane %v612_v55, %v1835_v58 }
 0x85e   : > { %621 = vst.msk [vmem:[%s543_s14] ss:$8 sm:$0x3] %vm1874_vm11, %v619_v56 }
 0x8e8   : > { %v632_v59 = vpop.xlane.xlu0 %631 }
 0x8e9   : > { %v633_v32 = vrot.slane %v632_v59, 4 }
 0x8eb   : > { %v634_v33 = vmax.f32 %v632_v59, %v633_v32 }
 0x8ed   : > { %v635_v34 = vrot.slane %v634_v33, 2 }
 0x8ef   : > { %v636_v35 = vmax.f32 %v634_v33, %v635_v34 }
 0x8f1   : > { %v637_v36 = vrot.slane %v636_v35, 1 }
 0x8f3   : > { %v638_v37 = vmax.f32 %v636_v35, %v637_v36 }
 0x8f5   : > { %1511 = vpush %v638_v37 }
 0x926   : > { %s1512_s19 = spop %1511 }
 0x927   : > { %v640_v39 = vstv %s1512_s19 }
 0x928   : > { %v2003_v41 = vsel %vm624_vm14, %v640_v39, %v1946_v15  ;;  %v2006_v43 = vsel %vm625_vm15, %v640_v39, %v1949_v16  ;;  %v2009_v45 = vsel %vm626_vm0, %v640_v39, %v1952_v17  ;;  %v2012_v46 = vsel %vm627_vm1, %v640_v39, %v1955_v19 }
 0x929   : > { %v646_v47 = vmax.f32 %v2003_v41, %v2006_v43  ;;  %v647_v48 = vmax.f32 %v2009_v45, %v2012_v46 }
 0x92b   : > { %v648_v50 = vmax.f32 %v646_v47, %v647_v48 }
 0x92d   : > { %v649_v51 = vrot.slane %v648_v50, 4 }
 0x92f   : > { %v650_v52 = vmax.f32 %v648_v50, %v649_v51 }
 0x931   : > { %v651_v15 = vrot.slane %v650_v52, 2 }
 0x933   : > { %v652_v53 = vmax.f32 %v650_v52, %v651_v15 }
 0x935   : > { %v653_v61 = vrot.slane %v652_v53, 1 }
 0x937   : > { %v654_v16 = vmax.f32 %v652_v53, %v653_v61 }
 0x939   : > { %1513 = vpush %v654_v16 }
 0x96a   : > { %s1514_s20 = spop %1513 }
 0x96b   : > { %v656_v17 = vstv %s1514_s20 }
 0x96c   : > { %vm657_vm2 = vcmp.ge.f32.partialorder %v2003_v41, %v656_v17  ;;  %vm658_vm4 = vcmp.ge.f32.partialorder %v2006_v43, %v656_v17  ;;  %vm659_vm5 = vcmp.ge.f32.partialorder %v2009_v45, %v656_v17  ;;  %vm660_vm6 = vcmp.ge.f32.partialorder %v2012_v46, %v656_v17 }
 0x96d   : > { %v661_v19 = vsel %vm657_vm2, %v1751_v30, 1073741824  ;;  %v662_v0 = vsel %vm658_vm4, %v1789_v49, 1073741824  ;;  %v663_v1 = vsel %vm659_vm5, %v1760_v42, 1073741824  ;;  %v664_v2 = vsel %vm660_vm6, %v1780_v7, 1073741824 }
 0x96e   : > { %vm665_vm7 = vcmp.lt.s32.totalorder %v661_v19, %v662_v0  ;;  %vm667_vm8 = vcmp.lt.s32.totalorder %v663_v1, %v664_v2 }
 0x96f   : > { %v666_v3 = vsel %vm665_vm7, %v661_v19, %v662_v0  ;;  %v668_v23 = vsel %vm667_vm8, %v663_v1, %v664_v2 }
 0x970   : > { %vm669_vm9 = vcmp.lt.s32.totalorder %v666_v3, %v668_v23 }
 0x971   : > { %v670_v4 = vsel %vm669_vm9, %v666_v3, %v668_v23 }
 0x972   : > { %v671_v5 = vrot.slane %v670_v4, 4 }
 0x974   : > { %vm672_vm10 = vcmp.lt.s32.totalorder %v670_v4, %v671_v5 }
 0x975   : > { %v673_v25 = vsel %vm672_vm10, %v670_v4, %v671_v5 }
 0x976   : > { %v674_v22 = vrot.slane %v673_v25, 2 }
 0x978   : > { %vm675_vm12 = vcmp.lt.s32.totalorder %v673_v25, %v674_v22 }
 0x979   : > { %v676_v24 = vsel %vm675_vm12, %v673_v25, %v674_v22 }
 0x97a   : > { %v677_v6 = vrot.slane %v676_v24, 1 }
 0x97c   : > { %vm678_vm13 = vcmp.lt.s32.totalorder %v676_v24, %v677_v6 }
 0x97d   : > { %v679_v8 = vsel %vm678_vm13, %v676_v24, %v677_v6 }
 0x97e   : > { %1515 = vpush %v679_v8 }
 0x9af   : > { %s2026_s21 = spop %1515 }
 0x9b0   : > { %s681_s22 = sshra.s32 %s2026_s21, 3  ;;  %s684_s24 = sand.u32 7, %s2026_s21  ;;  %v768_v5 = vstv %s2026_s21 }
 0x9b1   : > { %s1484_s25 = sshll.u32 %s681_s22, 4  ;;  %s1463_s30 = sshll.u32 %s2026_s21, 8  ;;  %vm769_vm7 = vcmp.eq.s32.totalorder %v1751_v30, %v768_v5  ;;  %vm770_vm8 = vcmp.eq.s32.totalorder %v1789_v49, %v768_v5  ;;  %vm771_vm9 = vcmp.eq.s32.totalorder %v1760_v42, %v768_v5  ;;  %vm772_vm10 = vcmp.eq.s32.totalorder %v1780_v7, %v768_v5 }
 0x9b2   : > { %s2030_s26 = sadd.s32 %s1484_s25, %s684_s24  ;;  %s1419_s24 = scalar_lea.smem %s1865_s23, 5 [#allocation3] }
 0x9b3   : > { %s688_s27 = scalar_lea.vmem [#allocation2], %s2030_s26 }
 0x9b4   : > { %v689_v9 = vld [vmem:[%s688_s27] ss:$8 sm:$0x3] }
 0x9b5   : > { %vm690_vm14 = vcmp.ge.f32.partialorder %v689_v9, %v656_v17  ;;  %v739_v47 = vrot.slane %v689_v9, %v1851_v62  ;;  %v743_v48 = vrot.slane %v689_v9, %v1854_v63 }
 0x9b6   : > { %v691_v10 = vsel %vm690_vm14, %v1845_v60, 1073741824 }
 0x9b7   : > { %v695_v11 = vrot.slane %v691_v10, %v1851_v62  ;;  %v699_v12 = vrot.slane %v691_v10, %v1854_v63 }
 0x9b9   : > { %v700_v13 = vsel %vm260_vm3, %v695_v11, 2147483647  ;;  %v701_v14 = vsel %vm260_vm3, %v699_v12, 2147483647 }
 0x9ba   : > { %vm702_vm15 = vcmp.lt.s32.totalorder %v700_v13, %v701_v14 }
 0x9bb   : > { %v703_v20 = vsel %vm702_vm15, %v700_v13, %v701_v14 }
 0x9bc   : > { %v705_v21 = vshra.s32 %v703_v20, 16  ;;  %v704_v27 = vand.u32 65535, %v703_v20 }
 0x9be   : > { %v707_v26 = vcvt.s32.f32 %v705_v21  ;;  %v706_v54 = vcvt.s32.f32 %v704_v27 }
 0x9c0   : > { %708 = vmin.xlane.f32.xlu1 %v707_v26 }
 0xa4d   : > { %v709_v28 = vpop.xlane.xlu1 %708 }
 0xa4e   : > { %vm710_vm0 = vcmp.eq.f32.partialorder %v707_v26, %v709_v28  ;;  %v715_v31 = vcvt.f32.s32 %v709_v28 }
 0xa4f   : > { %v711_v29 = vsel %vm710_vm0, %v706_v54, inf }
 0xa50   : > { %712 = vmin.xlane.f32.xlu0 %v711_v29  ;;  %v716_v56 = vshll.u32 %v715_v31, 16 }
 0xadd   : > { %v713_v55 = vpop.xlane.xlu0 %712 }
 0xade   : > { %v714_v59 = vcvt.f32.s32 %v713_v55 }
 0xae0   : > { %v717_v32 = vadd.s32 %v716_v56, %v714_v59 }
 0xae2   : > { %v718_v33 = vrot.slane %v717_v32, 4 }
 0xae4   : > { %vm719_vm1 = vcmp.lt.s32.totalorder %v717_v32, %v718_v33 }
 0xae5   : > { %v720_v34 = vsel %vm719_vm1, %v717_v32, %v718_v33 }
 0xae6   : > { %v721_v35 = vrot.slane %v720_v34, 2 }
 0xae8   : > { %vm722_vm2 = vcmp.lt.s32.totalorder %v720_v34, %v721_v35 }
 0xae9   : > { %v723_v36 = vsel %vm722_vm2, %v720_v34, %v721_v35 }
 0xaea   : > { %v724_v37 = vrot.slane %v723_v36, 1 }
 0xaec   : > { %vm725_vm4 = vcmp.lt.s32.totalorder %v723_v36, %v724_v37 }
 0xaed   : > { %v726_v38 = vsel %vm725_vm4, %v723_v36, %v724_v37 }
 0xaee   : > { %1517 = vpush %v726_v38 }
 0xb1f   : > { %s1518_s29 = spop %1517 }
 0xb20   : > { %s729_s3 = sadd.s32 %s1518_s29, %s1463_s30  ;;  %v732_v39 = vstv %s1518_s29 }
 0xb21   : > { %731 = sst [smem:[%s1407_s28]] %s729_s3  ;;  %vm733_vm5 = vcmp.eq.s32.totalorder %v1763_v44, %v732_v39  ;;  %vm734_vm6 = vcmp.eq.s32.totalorder %v1774_v57, %v732_v39 }
 0xb22   : > { %v746_v50 = vsel %vm733_vm5, -3e+38, %v739_v47  ;;  %v747_v51 = vsel %vm734_vm6, -3e+38, %v743_v48 }
 0xb23   : > { %v773_v52 = vsel %vm260_vm3, %v746_v50, -inf  ;;  %v774_v15 = vsel %vm260_vm3, %v747_v51, -inf  ;;  %v750_v53 = vcombine.low %v746_v50, %v747_v51 }
 0xb24   : > { %v775_v61 = vmax.f32 %v773_v52, %v774_v15 }
 0xb25   : > { %v757_v16 = vrot.slane %v750_v53, %v1835_v58 }
 0xb26   : > { %776 = vmax.xlane.f32.xlu1 %v775_v61 }
 0xb27   : > { %v764_v17 = vrot.slane %v757_v16, %v1835_v58 }
 0xb29   : > { %766 = vst.msk [vmem:[%s688_s27] ss:$8 sm:$0x3] %vm1874_vm11, %v764_v17 }
 0xbb3   : > { %v777_v19 = vpop.xlane.xlu1 %776 }
 0xbb4   : > { %v778_v0 = vrot.slane %v777_v19, 4 }
 0xbb6   : > { %v779_v1 = vmax.f32 %v777_v19, %v778_v0 }
 0xbb8   : > { %v780_v2 = vrot.slane %v779_v1, 2 }
 0xbba   : > { %v781_v3 = vmax.f32 %v779_v1, %v780_v2 }
 0xbbc   : > { %v782_v23 = vrot.slane %v781_v3, 1 }
 0xbbe   : > { %v783_v4 = vmax.f32 %v781_v3, %v782_v23 }
 0xbc0   : > { %1519 = vpush %v783_v4 }
 0xbf1   : > { %s1520_s4 = spop %1519 }
 0xbf2   : > { %v785_v25 = vstv %s1520_s4 }
 0xbf3   : > { %v2060_v22 = vsel %vm769_vm7, %v785_v25, %v2003_v41  ;;  %v2063_v24 = vsel %vm770_vm8, %v785_v25, %v2006_v43  ;;  %v2066_v6 = vsel %vm771_vm9, %v785_v25, %v2009_v45  ;;  %v2069_v8 = vsel %vm772_vm10, %v785_v25, %v2012_v46 }
 0xbf4   : > { %v791_v9 = vmax.f32 %v2060_v22, %v2063_v24  ;;  %v792_v10 = vmax.f32 %v2066_v6, %v2069_v8 }
 0xbf6   : > { %v793_v11 = vmax.f32 %v791_v9, %v792_v10 }
 0xbf8   : > { %v794_v12 = vrot.slane %v793_v11, 4 }
 0xbfa   : > { %v795_v13 = vmax.f32 %v793_v11, %v794_v12 }
 0xbfc   : > { %v796_v41 = vrot.slane %v795_v13, 2 }
 0xbfe   : > { %v797_v14 = vmax.f32 %v795_v13, %v796_v41 }
 0xc00   : > { %v798_v20 = vrot.slane %v797_v14, 1 }
 0xc02   : > { %v799_v43 = vmax.f32 %v797_v14, %v798_v20 }
 0xc04   : > { %1521 = vpush %v799_v43 }
 0xc35   : > { %s1522_s5 = spop %1521 }
 0xc36   : > { %v801_v45 = vstv %s1522_s5 }
 0xc37   : > { %vm802_vm12 = vcmp.ge.f32.partialorder %v2060_v22, %v801_v45  ;;  %vm803_vm13 = vcmp.ge.f32.partialorder %v2063_v24, %v801_v45  ;;  %vm804_vm14 = vcmp.ge.f32.partialorder %v2066_v6, %v801_v45  ;;  %vm805_vm15 = vcmp.ge.f32.partialorder %v2069_v8, %v801_v45 }
 0xc38   : > { %v806_v46 = vsel %vm802_vm12, %v1751_v30, 1073741824  ;;  %v807_v21 = vsel %vm803_vm13, %v1789_v49, 1073741824  ;;  %v808_v26 = vsel %vm804_vm14, %v1760_v42, 1073741824  ;;  %v809_v27 = vsel %vm805_vm15, %v1780_v7, 1073741824 }
 0xc39   : > { %vm810_vm0 = vcmp.lt.s32.totalorder %v806_v46, %v807_v21  ;;  %vm812_vm1 = vcmp.lt.s32.totalorder %v808_v26, %v809_v27 }
 0xc3a   : > { %v811_v28 = vsel %vm810_vm0, %v806_v46, %v807_v21  ;;  %v813_v54 = vsel %vm812_vm1, %v808_v26, %v809_v27 }
 0xc3b   : > { %vm814_vm2 = vcmp.lt.s32.totalorder %v811_v28, %v813_v54 }
 0xc3c   : > { %v815_v29 = vsel %vm814_vm2, %v811_v28, %v813_v54 }
 0xc3d   : > { %v816_v31 = vrot.slane %v815_v29, 4 }
 0xc3f   : > { %vm817_vm4 = vcmp.lt.s32.totalorder %v815_v29, %v816_v31 }
 0xc40   : > { %v818_v55 = vsel %vm817_vm4, %v815_v29, %v816_v31 }
 0xc41   : > { %v819_v56 = vrot.slane %v818_v55, 2 }
 0xc43   : > { %vm820_vm5 = vcmp.lt.s32.totalorder %v818_v55, %v819_v56 }
 0xc44   : > { %v821_v59 = vsel %vm820_vm5, %v818_v55, %v819_v56 }
 0xc45   : > { %v822_v32 = vrot.slane %v821_v59, 1 }
 0xc47   : > { %vm823_vm6 = vcmp.lt.s32.totalorder %v821_v59, %v822_v32 }
 0xc48   : > { %v824_v33 = vsel %vm823_vm6, %v821_v59, %v822_v32 }
 0xc49   : > { %1523 = vpush %v824_v33 }
 0xc7a   : > { %s2083_s6 = spop %1523 }
 0xc7b   : > { %s826_s7 = sshra.s32 %s2083_s6, 3  ;;  %s829_s8 = sand.u32 7, %s2083_s6  ;;  %v913_v31 = vstv %s2083_s6 }
 0xc7c   : > { %s1485_s9 = sshll.u32 %s826_s7, 4  ;;  %s1467_s13 = sshll.u32 %s2083_s6, 8  ;;  %vm914_vm0 = vcmp.eq.s32.totalorder %v1751_v30, %v913_v31  ;;  %vm915_vm1 = vcmp.eq.s32.totalorder %v1789_v49, %v913_v31  ;;  %vm916_vm2 = vcmp.eq.s32.totalorder %v1760_v42, %v913_v31  ;;  %vm917_vm4 = vcmp.eq.s32.totalorder %v1780_v7, %v913_v31 }
 0xc7d   : > { %s2087_s10 = sadd.s32 %s1485_s9, %s829_s8  ;;  %s1425_s8 = scalar_lea.smem %s1865_s23, 6 [#allocation3] }
 0xc7e   : > { %s833_s11 = scalar_lea.vmem [#allocation2], %s2087_s10 }
 0xc7f   : > { %v834_v34 = vld [vmem:[%s833_s11] ss:$8 sm:$0x3] }
 0xc80   : > { %vm835_vm7 = vcmp.ge.f32.partialorder %v834_v34, %v801_v45  ;;  %v884_v9 = vrot.slane %v834_v34, %v1851_v62  ;;  %v888_v10 = vrot.slane %v834_v34, %v1854_v63 }
 0xc81   : > { %v836_v35 = vsel %vm835_vm7, %v1845_v60, 1073741824 }
 0xc82   : > { %v840_v36 = vrot.slane %v836_v35, %v1851_v62  ;;  %v844_v37 = vrot.slane %v836_v35, %v1854_v63 }
 0xc84   : > { %v845_v38 = vsel %vm260_vm3, %v840_v36, 2147483647  ;;  %v846_v39 = vsel %vm260_vm3, %v844_v37, 2147483647 }
 0xc85   : > { %vm847_vm8 = vcmp.lt.s32.totalorder %v845_v38, %v846_v39 }
 0xc86   : > { %v848_v47 = vsel %vm847_vm8, %v845_v38, %v846_v39 }
 0xc87   : > { %v850_v48 = vshra.s32 %v848_v47, 16  ;;  %v849_v51 = vand.u32 65535, %v848_v47 }
 0xc89   : > { %v852_v50 = vcvt.s32.f32 %v850_v48  ;;  %v851_v15 = vcvt.s32.f32 %v849_v51 }
 0xc8b   : > { %853 = vmin.xlane.f32.xlu0 %v852_v50 }
 0xd18   : > { %v854_v52 = vpop.xlane.xlu0 %853 }
 0xd19   : > { %vm855_vm9 = vcmp.eq.f32.partialorder %v852_v50, %v854_v52  ;;  %v860_v61 = vcvt.f32.s32 %v854_v52 }
 0xd1a   : > { %v856_v53 = vsel %vm855_vm9, %v851_v15, inf }
 0xd1b   : > { %857 = vmin.xlane.f32.xlu1 %v856_v53  ;;  %v861_v17 = vshll.u32 %v860_v61, 16 }
 0xda8   : > { %v858_v16 = vpop.xlane.xlu1 %857 }
 0xda9   : > { %v859_v19 = vcvt.f32.s32 %v858_v16 }
 0xdab   : > { %v862_v0 = vadd.s32 %v861_v17, %v859_v19 }
 0xdad   : > { %v863_v1 = vrot.slane %v862_v0, 4 }
 0xdaf   : > { %vm864_vm10 = vcmp.lt.s32.totalorder %v862_v0, %v863_v1 }
 0xdb0   : > { %v865_v2 = vsel %vm864_vm10, %v862_v0, %v863_v1 }
 0xdb1   : > { %v866_v3 = vrot.slane %v865_v2, 2 }
 0xdb3   : > { %vm867_vm12 = vcmp.lt.s32.totalorder %v865_v2, %v866_v3 }
 0xdb4   : > { %v868_v23 = vsel %vm867_vm12, %v865_v2, %v866_v3 }
 0xdb5   : > { %v869_v4 = vrot.slane %v868_v23, 1 }
 0xdb7   : > { %vm870_vm13 = vcmp.lt.s32.totalorder %v868_v23, %v869_v4 }
 0xdb8   : > { %v871_v5 = vsel %vm870_vm13, %v868_v23, %v869_v4 }
 0xdb9   : > { %1525 = vpush %v871_v5 }
 0xdea   : > { %s1526_s1 = spop %1525 }
 0xdeb   : > { %s874_s14 = sadd.s32 %s1526_s1, %s1467_s13  ;;  %v877_v25 = vstv %s1526_s1 }
 0xdec   : > { %876 = sst [smem:[%s1413_s12]] %s874_s14  ;;  %vm878_vm14 = vcmp.eq.s32.totalorder %v1763_v44, %v877_v25  ;;  %vm879_vm15 = vcmp.eq.s32.totalorder %v1774_v57, %v877_v25 }
 0xded   : > { %v891_v11 = vsel %vm878_vm14, -3e+38, %v884_v9  ;;  %v892_v12 = vsel %vm879_vm15, -3e+38, %v888_v10 }
 0xdee   : > { %v918_v13 = vsel %vm260_vm3, %v891_v11, -inf  ;;  %v919_v41 = vsel %vm260_vm3, %v892_v12, -inf  ;;  %v895_v14 = vcombine.low %v891_v11, %v892_v12 }
 0xdef   : > { %v920_v20 = vmax.f32 %v918_v13, %v919_v41 }
 0xdf0   : > { %v902_v43 = vrot.slane %v895_v14, %v1835_v58 }
 0xdf1   : > { %921 = vmax.xlane.f32.xlu0 %v920_v20 }
 0xdf2   : > { %v909_v45 = vrot.slane %v902_v43, %v1835_v58 }
 0xdf4   : > { %911 = vst.msk [vmem:[%s833_s11] ss:$8 sm:$0x3] %vm1874_vm11, %v909_v45 }
 0xe7e   : > { %v922_v46 = vpop.xlane.xlu0 %921 }
 0xe7f   : > { %v923_v21 = vrot.slane %v922_v46, 4 }
 0xe81   : > { %v924_v26 = vmax.f32 %v922_v46, %v923_v21 }
 0xe83   : > { %v925_v27 = vrot.slane %v924_v26, 2 }
 0xe85   : > { %v926_v28 = vmax.f32 %v924_v26, %v925_v27 }
 0xe87   : > { %v927_v54 = vrot.slane %v926_v28, 1 }
 0xe89   : > { %v928_v29 = vmax.f32 %v926_v28, %v927_v54 }
 0xe8b   : > { %1527 = vpush %v928_v29 }
 0xebc   : > { %s1528_s15 = spop %1527 }
 0xebd   : > { %v930_v55 = vstv %s1528_s15 }
 0xebe   : > { %v2117_v56 = vsel %vm914_vm0, %v930_v55, %v2060_v22  ;;  %v2120_v59 = vsel %vm915_vm1, %v930_v55, %v2063_v24  ;;  %v2123_v32 = vsel %vm916_vm2, %v930_v55, %v2066_v6  ;;  %v2126_v33 = vsel %vm917_vm4, %v930_v55, %v2069_v8 }
 0xebf   : > { %v936_v34 = vmax.f32 %v2117_v56, %v2120_v59  ;;  %v937_v35 = vmax.f32 %v2123_v32, %v2126_v33 }
 0xec1   : > { %v938_v36 = vmax.f32 %v936_v34, %v937_v35 }
 0xec3   : > { %v939_v37 = vrot.slane %v938_v36, 4 }
 0xec5   : > { %v940_v38 = vmax.f32 %v938_v36, %v939_v37 }
 0xec7   : > { %v941_v22 = vrot.slane %v940_v38, 2 }
 0xec9   : > { %v942_v39 = vmax.f32 %v940_v38, %v941_v22 }
 0xecb   : > { %v943_v47 = vrot.slane %v942_v39, 1 }
 0xecd   : > { %v944_v24 = vmax.f32 %v942_v39, %v943_v47 }
 0xecf   : > { %1529 = vpush %v944_v24 }
 0xf00   : > { %s1530_s16 = spop %1529 }
 0xf01   : > { %v946_v6 = vstv %s1530_s16 }
 0xf02   : > { %vm947_vm5 = vcmp.ge.f32.partialorder %v2117_v56, %v946_v6  ;;  %vm948_vm6 = vcmp.ge.f32.partialorder %v2120_v59, %v946_v6  ;;  %vm949_vm7 = vcmp.ge.f32.partialorder %v2123_v32, %v946_v6  ;;  %vm950_vm8 = vcmp.ge.f32.partialorder %v2126_v33, %v946_v6 }
 0xf03   : > { %v951_v8 = vsel %vm947_vm5, %v1751_v30, 1073741824  ;;  %v952_v48 = vsel %vm948_vm6, %v1789_v49, 1073741824  ;;  %v953_v50 = vsel %vm949_vm7, %v1760_v42, 1073741824  ;;  %v954_v51 = vsel %vm950_vm8, %v1780_v7, 1073741824 }
 0xf04   : > { %vm955_vm9 = vcmp.lt.s32.totalorder %v951_v8, %v952_v48  ;;  %vm957_vm10 = vcmp.lt.s32.totalorder %v953_v50, %v954_v51 }
 0xf05   : > { %v956_v52 = vsel %vm955_vm9, %v951_v8, %v952_v48  ;;  %v958_v15 = vsel %vm957_vm10, %v953_v50, %v954_v51 }
 0xf06   : > { %vm959_vm12 = vcmp.lt.s32.totalorder %v956_v52, %v958_v15 }
 0xf07   : > { %v960_v53 = vsel %vm959_vm12, %v956_v52, %v958_v15 }
 0xf08   : > { %v961_v61 = vrot.slane %v960_v53, 4 }
 0xf0a   : > { %vm962_vm13 = vcmp.lt.s32.totalorder %v960_v53, %v961_v61 }
 0xf0b   : > { %v963_v16 = vsel %vm962_vm13, %v960_v53, %v961_v61 }
 0xf0c   : > { %v964_v17 = vrot.slane %v963_v16, 2 }
 0xf0e   : > { %vm965_vm14 = vcmp.lt.s32.totalorder %v963_v16, %v964_v17 }
 0xf0f   : > { %v966_v19 = vsel %vm965_vm14, %v963_v16, %v964_v17 }
 0xf10   : > { %v967_v0 = vrot.slane %v966_v19, 1 }
 0xf12   : > { %vm968_vm15 = vcmp.lt.s32.totalorder %v966_v19, %v967_v0 }
 0xf13   : > { %v969_v1 = vsel %vm968_vm15, %v966_v19, %v967_v0 }
 0xf14   : > { %1531 = vpush %v969_v1 }
 0xf45   : > { %s2140_s17 = spop %1531 }
 0xf46   : > { %s971_s18 = sshra.s32 %s2140_s17, 3  ;;  %s974_s19 = sand.u32 7, %s2140_s17  ;;  %v1058_v61 = vstv %s2140_s17 }
 0xf47   : > { %s1486_s20 = sshll.u32 %s971_s18, 4  ;;  %s1471_s26 = sshll.u32 %s2140_s17, 8  ;;  %vm1059_vm9 = vcmp.eq.s32.totalorder %v1751_v30, %v1058_v61  ;;  %vm1060_vm10 = vcmp.eq.s32.totalorder %v1789_v49, %v1058_v61  ;;  %vm1061_vm12 = vcmp.eq.s32.totalorder %v1760_v42, %v1058_v61  ;;  %vm1062_vm13 = vcmp.eq.s32.totalorder %v1780_v7, %v1058_v61 }
 0xf48   : > { %s2144_s21 = sadd.s32 %s1486_s20, %s974_s19  ;;  %s1431_s19 = scalar_lea.smem %s1865_s23, 7 [#allocation3] }
 0xf49   : > { %s978_s22 = scalar_lea.vmem [#allocation2], %s2144_s21 }
 0xf4a   : > { %v979_v2 = vld [vmem:[%s978_s22] ss:$8 sm:$0x3] }
 0xf4b   : > { %vm980_vm0 = vcmp.ge.f32.partialorder %v979_v2, %v946_v6  ;;  %v1029_v34 = vrot.slane %v979_v2, %v1851_v62  ;;  %v1033_v35 = vrot.slane %v979_v2, %v1854_v63 }
 0xf4c   : > { %v981_v3 = vsel %vm980_vm0, %v1845_v60, 1073741824 }
 0xf4d   : > { %v985_v23 = vrot.slane %v981_v3, %v1851_v62  ;;  %v989_v4 = vrot.slane %v981_v3, %v1854_v63 }
 0xf4f   : > { %v990_v5 = vsel %vm260_vm3, %v985_v23, 2147483647  ;;  %v991_v25 = vsel %vm260_vm3, %v989_v4, 2147483647 }
 0xf50   : > { %vm992_vm1 = vcmp.lt.s32.totalorder %v990_v5, %v991_v25 }
 0xf51   : > { %v993_v9 = vsel %vm992_vm1, %v990_v5, %v991_v25 }
 0xf52   : > { %v995_v10 = vshra.s32 %v993_v9, 16  ;;  %v994_v12 = vand.u32 65535, %v993_v9 }
 0xf54   : > { %v997_v11 = vcvt.s32.f32 %v995_v10  ;;  %v996_v41 = vcvt.s32.f32 %v994_v12 }
 0xf56   : > { %998 = vmin.xlane.f32.xlu1 %v997_v11 }
 0xfe3   : > { %v999_v13 = vpop.xlane.xlu1 %998 }
 0xfe4   : > { %vm1000_vm2 = vcmp.eq.f32.partialorder %v997_v11, %v999_v13  ;;  %v1005_v20 = vcvt.f32.s32 %v999_v13 }
 0xfe5   : > { %v1001_v14 = vsel %vm1000_vm2, %v996_v41, inf }
 0xfe6   : > { %1002 = vmin.xlane.f32.xlu0 %v1001_v14  ;;  %v1006_v45 = vshll.u32 %v1005_v20, 16 }
0x1073   : > { %v1003_v43 = vpop.xlane.xlu0 %1002 }
0x1074   : > { %v1004_v46 = vcvt.f32.s32 %v1003_v43 }
0x1076   : > { %v1007_v21 = vadd.s32 %v1006_v45, %v1004_v46 }
0x1078   : > { %v1008_v26 = vrot.slane %v1007_v21, 4 }
0x107a   : > { %vm1009_vm4 = vcmp.lt.s32.totalorder %v1007_v21, %v1008_v26 }
0x107b   : > { %v1010_v27 = vsel %vm1009_vm4, %v1007_v21, %v1008_v26 }
0x107c   : > { %v1011_v28 = vrot.slane %v1010_v27, 2 }
0x107e   : > { %vm1012_vm5 = vcmp.lt.s32.totalorder %v1010_v27, %v1011_v28 }
0x107f   : > { %v1013_v54 = vsel %vm1012_vm5, %v1010_v27, %v1011_v28 }
0x1080   : > { %v1014_v29 = vrot.slane %v1013_v54, 1 }
0x1082   : > { %vm1015_vm6 = vcmp.lt.s32.totalorder %v1013_v54, %v1014_v29 }
0x1083   : > { %v1016_v31 = vsel %vm1015_vm6, %v1013_v54, %v1014_v29 }
0x1084   : > { %1533 = vpush %v1016_v31 }
0x10b5   : > { %s1534_s25 = spop %1533 }
0x10b6   : > { %s1019_s27 = sadd.s32 %s1534_s25, %s1471_s26  ;;  %v1022_v55 = vstv %s1534_s25  ;;  %s1376_s26 = sshll.u32 (%p182_p0), %s2307_s2, 4  ;;  %s1377_s26 = int_to_ptr.vmem [resolvable:$true] %s1376_s26 }
0x10b7   : > { %1021 = sst [smem:[%s1419_s24]] %s1019_s27  ;;  %vm1023_vm7 = vcmp.eq.s32.totalorder %v1763_v44, %v1022_v55  ;;  %vm1024_vm8 = vcmp.eq.s32.totalorder %v1774_v57, %v1022_v55  ;;  %s1643_s27 = scalar_lea.vmem (%p182_p0), %s1377_s26, 32 }
0x10b8   : > { %v1036_v36 = vsel %vm1023_vm7, -3e+38, %v1029_v34  ;;  %v1037_v37 = vsel %vm1024_vm8, -3e+38, %v1033_v35  ;;  %p1644_p1 = scmp.ne.s32.totalorder (%p182_p0), %s1377_s26, %s1643_s27  ;;  %p1648_p2 = scmp.lt.s32.totalorder (%p182_p0), %s1377_s26, %s1377_s26 }
0x10b9   : > { %v1063_v38 = vsel %vm260_vm3, %v1036_v36, -inf  ;;  %v1064_v22 = vsel %vm260_vm3, %v1037_v37, -inf  ;;  %v1040_v39 = vcombine.low %v1036_v36, %v1037_v37  ;;  %p1649_p3 = scmp.lt.s32.totalorder (%p182_p0), %s1643_s27, %s1643_s27 }
0x10ba   : > { %v1065_v47 = vmax.f32 %v1063_v38, %v1064_v22 }
0x10bb   : > { %v1047_v24 = vrot.slane %v1040_v39, %v1835_v58  ;;  %p1650_p4 = por (%p182_p0), %p1649_p3, %p1648_p2 }
0x10bc   : > { %1066 = vmax.xlane.f32.xlu1 %v1065_v47 }
0x10bd   : > { %v1054_v6 = vrot.slane %v1047_v24, %v1835_v58  ;;  %p1651_p5 = pnand (%p182_p0), %p1650_p4, %p1644_p1 }
0x10bf   : > { %1056 = vst.msk [vmem:[%s978_s22] ss:$8 sm:$0x3] %vm1874_vm11, %v1054_v6 }
0x1149   : > { %v1067_v8 = vpop.xlane.xlu1 %1066 }
0x114a   : > { %v1068_v48 = vrot.slane %v1067_v8, 4 }
0x114c   : > { %v1069_v50 = vmax.f32 %v1067_v8, %v1068_v48 }
0x114e   : > { %v1070_v51 = vrot.slane %v1069_v50, 2 }
0x1150   : > { %v1071_v52 = vmax.f32 %v1069_v50, %v1070_v51 }
0x1152   : > { %v1072_v15 = vrot.slane %v1071_v52, 1 }
0x1154   : > { %v1073_v53 = vmax.f32 %v1071_v52, %v1072_v15 }
0x1156   : > { %1535 = vpush %v1073_v53 }
0x1187   : > { %s1536_s28 = spop %1535 }
0x1188   : > { %v1075_v16 = vstv %s1536_s28 }
0x1189   : > { %v2174_v17 = vsel %vm1059_vm9, %v1075_v16, %v2117_v56  ;;  %v2177_v19 = vsel %vm1060_vm10, %v1075_v16, %v2120_v59  ;;  %v2180_v0 = vsel %vm1061_vm12, %v1075_v16, %v2123_v32  ;;  %v2183_v1 = vsel %vm1062_vm13, %v1075_v16, %v2126_v33 }
0x118a   : > { %v1081_v2 = vmax.f32 %v2174_v17, %v2177_v19  ;;  %v1082_v3 = vmax.f32 %v2180_v0, %v2183_v1 }
0x118c   : > { %v1083_v23 = vmax.f32 %v1081_v2, %v1082_v3 }
0x118e   : > { %v1084_v4 = vrot.slane %v1083_v23, 4 }
0x1190   : > { %v1085_v5 = vmax.f32 %v1083_v23, %v1084_v4 }
0x1192   : > { %v1086_v56 = vrot.slane %v1085_v5, 2 }
0x1194   : > { %v1087_v25 = vmax.f32 %v1085_v5, %v1086_v56 }
0x1196   : > { %v1088_v9 = vrot.slane %v1087_v25, 1 }
0x1198   : > { %v1089_v59 = vmax.f32 %v1087_v25, %v1088_v9 }
0x119a   : > { %1537 = vpush %v1089_v59 }
0x11cb   : > { %s1538_s29 = spop %1537 }
0x11cc   : > { %v1091_v32 = vstv %s1538_s29 }
0x11cd   : > { %vm1092_vm14 = vcmp.ge.f32.partialorder %v2174_v17, %v1091_v32  ;;  %vm1093_vm15 = vcmp.ge.f32.partialorder %v2177_v19, %v1091_v32  ;;  %vm1094_vm0 = vcmp.ge.f32.partialorder %v2180_v0, %v1091_v32  ;;  %vm1095_vm1 = vcmp.ge.f32.partialorder %v2183_v1, %v1091_v32 }
0x11ce   : > { %v1096_v33 = vsel %vm1092_vm14, %v1751_v30, 1073741824  ;;  %v1097_v10 = vsel %vm1093_vm15, %v1789_v49, 1073741824  ;;  %v1098_v11 = vsel %vm1094_vm0, %v1760_v42, 1073741824  ;;  %v1099_v12 = vsel %vm1095_vm1, %v1780_v7, 1073741824 }
0x11cf   : > { %vm1100_vm2 = vcmp.lt.s32.totalorder %v1096_v33, %v1097_v10  ;;  %vm1102_vm4 = vcmp.lt.s32.totalorder %v1098_v11, %v1099_v12 }
0x11d0   : > { %v1101_v13 = vsel %vm1100_vm2, %v1096_v33, %v1097_v10  ;;  %v1103_v41 = vsel %vm1102_vm4, %v1098_v11, %v1099_v12 }
0x11d1   : > { %vm1104_vm5 = vcmp.lt.s32.totalorder %v1101_v13, %v1103_v41 }
0x11d2   : > { %v1105_v14 = vsel %vm1104_vm5, %v1101_v13, %v1103_v41 }
0x11d3   : > { %v1106_v20 = vrot.slane %v1105_v14, 4 }
0x11d5   : > { %vm1107_vm6 = vcmp.lt.s32.totalorder %v1105_v14, %v1106_v20 }
0x11d6   : > { %v1108_v43 = vsel %vm1107_vm6, %v1105_v14, %v1106_v20 }
0x11d7   : > { %v1109_v45 = vrot.slane %v1108_v43, 2 }
0x11d9   : > { %vm1110_vm7 = vcmp.lt.s32.totalorder %v1108_v43, %v1109_v45 }
0x11da   : > { %v1111_v46 = vsel %vm1110_vm7, %v1108_v43, %v1109_v45 }
0x11db   : > { %v1112_v21 = vrot.slane %v1111_v46, 1 }
0x11dd   : > { %vm1113_vm8 = vcmp.lt.s32.totalorder %v1111_v46, %v1112_v21 }
0x11de   : > { %v1114_v26 = vsel %vm1113_vm8, %v1111_v46, %v1112_v21 }
0x11df   : > { %1539 = vpush %v1114_v26 }
0x1210   : > { %s2197_s30 = spop %1539 }
0x1211   : > { %s1116_s3 = sshra.s32 %s2197_s30, 3  ;;  %s1119_s4 = sand.u32 7, %s2197_s30  ;;  %v1203_v20 = vstv %s2197_s30 }
0x1212   : > { %s1487_s5 = sshll.u32 %s1116_s3, 4  ;;  %s1475_s10 = sshll.u32 %s2197_s30, 8  ;;  %vm1204_vm2 = vcmp.eq.s32.totalorder %v1751_v30, %v1203_v20  ;;  %vm1205_vm4 = vcmp.eq.s32.totalorder %v1789_v49, %v1203_v20  ;;  %vm1206_vm5 = vcmp.eq.s32.totalorder %v1760_v42, %v1203_v20  ;;  %vm1207_vm6 = vcmp.eq.s32.totalorder %v1780_v7, %v1203_v20 }
0x1213   : > { %s2201_s6 = sadd.s32 %s1487_s5, %s1119_s4 }
0x1214   : > { %s1123_s7 = scalar_lea.vmem [#allocation2], %s2201_s6 }
0x1215   : > { %v1124_v27 = vld [vmem:[%s1123_s7] ss:$8 sm:$0x3] }
0x1216   : > { %vm1125_vm9 = vcmp.ge.f32.partialorder %v1124_v27, %v1091_v32  ;;  %v1174_v2 = vrot.slane %v1124_v27, %v1851_v62  ;;  %v1178_v3 = vrot.slane %v1124_v27, %v1854_v63 }
0x1217   : > { %v1126_v28 = vsel %vm1125_vm9, %v1845_v60, 1073741824 }
0x1218   : > { %v1130_v54 = vrot.slane %v1126_v28, %v1851_v62  ;;  %v1134_v29 = vrot.slane %v1126_v28, %v1854_v63 }
0x121a   : > { %v1135_v31 = vsel %vm260_vm3, %v1130_v54, 2147483647  ;;  %v1136_v55 = vsel %vm260_vm3, %v1134_v29, 2147483647 }
0x121b   : > { %vm1137_vm10 = vcmp.lt.s32.totalorder %v1135_v31, %v1136_v55 }
0x121c   : > { %v1138_v34 = vsel %vm1137_vm10, %v1135_v31, %v1136_v55 }
0x121d   : > { %v1140_v35 = vshra.s32 %v1138_v34, 16  ;;  %v1139_v37 = vand.u32 65535, %v1138_v34 }
0x121f   : > { %v1142_v36 = vcvt.s32.f32 %v1140_v35  ;;  %v1141_v22 = vcvt.s32.f32 %v1139_v37 }
0x1221   : > { %1143 = vmin.xlane.f32.xlu0 %v1142_v36 }
0x12ae   : > { %v1144_v38 = vpop.xlane.xlu0 %1143 }
0x12af   : > { %vm1145_vm12 = vcmp.eq.f32.partialorder %v1142_v36, %v1144_v38  ;;  %v1150_v47 = vcvt.f32.s32 %v1144_v38 }
0x12b0   : > { %v1146_v39 = vsel %vm1145_vm12, %v1141_v22, inf }
0x12b1   : > { %1147 = vmin.xlane.f32.xlu1 %v1146_v39  ;;  %v1151_v6 = vshll.u32 %v1150_v47, 16 }
0x133e   : > { %v1148_v24 = vpop.xlane.xlu1 %1147 }
0x133f   : > { %v1149_v8 = vcvt.f32.s32 %v1148_v24 }
0x1341   : > { %v1152_v48 = vadd.s32 %v1151_v6, %v1149_v8 }
0x1343   : > { %v1153_v50 = vrot.slane %v1152_v48, 4 }
0x1345   : > { %vm1154_vm13 = vcmp.lt.s32.totalorder %v1152_v48, %v1153_v50 }
0x1346   : > { %v1155_v51 = vsel %vm1154_vm13, %v1152_v48, %v1153_v50 }
0x1347   : > { %v1156_v52 = vrot.slane %v1155_v51, 2 }
0x1349   : > { %vm1157_vm14 = vcmp.lt.s32.totalorder %v1155_v51, %v1156_v52 }
0x134a   : > { %v1158_v15 = vsel %vm1157_vm14, %v1155_v51, %v1156_v52 }
0x134b   : > { %v1159_v53 = vrot.slane %v1158_v15, 1 }
0x134d   : > { %vm1160_vm15 = vcmp.lt.s32.totalorder %v1158_v15, %v1159_v53 }
0x134e   : > { %v1161_v61 = vsel %vm1160_vm15, %v1158_v15, %v1159_v53 }
0x134f   : > { %1541 = vpush %v1161_v61 }
0x1380   : > { %s1542_s9 = spop %1541 }
0x1381   : > { %s1164_s11 = sadd.s32 %s1542_s9, %s1475_s10  ;;  %v1167_v16 = vstv %s1542_s9 }
0x1382   : > { %1166 = sst [smem:[%s1425_s8]] %s1164_s11  ;;  %vm1168_vm0 = vcmp.eq.s32.totalorder %v1763_v44, %v1167_v16  ;;  %vm1169_vm1 = vcmp.eq.s32.totalorder %v1774_v57, %v1167_v16 }
0x1383   : > { %v1181_v23 = vsel %vm1168_vm0, -3e+38, %v1174_v2  ;;  %v1182_v4 = vsel %vm1169_vm1, -3e+38, %v1178_v3 }
0x1384   : > { %v1208_v5 = vsel %vm260_vm3, %v1181_v23, -inf  ;;  %v1209_v56 = vsel %vm260_vm3, %v1182_v4, -inf  ;;  %v1185_v25 = vcombine.low %v1181_v23, %v1182_v4 }
0x1385   : > { %v1210_v9 = vmax.f32 %v1208_v5, %v1209_v56 }
0x1386   : > { %v1192_v59 = vrot.slane %v1185_v25, %v1835_v58 }
0x1387   : > { %1211 = vmax.xlane.f32.xlu0 %v1210_v9 }
0x1388   : > { %v1199_v32 = vrot.slane %v1192_v59, %v1835_v58 }
0x138a   : > { %1201 = vst.msk [vmem:[%s1123_s7] ss:$8 sm:$0x3] %vm1874_vm11, %v1199_v32 }
0x1414   : > { %v1212_v33 = vpop.xlane.xlu0 %1211 }
0x1415   : > { %v1213_v10 = vrot.slane %v1212_v33, 4 }
0x1417   : > { %v1214_v11 = vmax.f32 %v1212_v33, %v1213_v10 }
0x1419   : > { %v1215_v12 = vrot.slane %v1214_v11, 2 }
0x141b   : > { %v1216_v13 = vmax.f32 %v1214_v11, %v1215_v12 }
0x141d   : > { %v1217_v41 = vrot.slane %v1216_v13, 1 }
0x141f   : > { %v1218_v14 = vmax.f32 %v1216_v13, %v1217_v41 }
0x1421   : > { %1543 = vpush %v1218_v14 }
0x1452   : > { %s1544_s12 = spop %1543 }
0x1453   : > { %v1220_v43 = vstv %s1544_s12 }
0x1454   : > { %v2231_v45 = vsel %vm1204_vm2, %v1220_v43, %v2174_v17  ;;  %v2234_v46 = vsel %vm1205_vm4, %v1220_v43, %v2177_v19  ;;  %v2237_v21 = vsel %vm1206_vm5, %v1220_v43, %v2180_v0  ;;  %v2240_v26 = vsel %vm1207_vm6, %v1220_v43, %v2183_v1 }
0x1455   : > { %v1226_v27 = vmax.f32 %v2231_v45, %v2234_v46  ;;  %v1227_v28 = vmax.f32 %v2237_v21, %v2240_v26 }
0x1457   : > { %v1228_v54 = vmax.f32 %v1226_v27, %v1227_v28 }
0x1459   : > { %v1229_v29 = vrot.slane %v1228_v54, 4 }
0x145b   : > { %v1230_v31 = vmax.f32 %v1228_v54, %v1229_v29 }
0x145d   : > { %v1231_v17 = vrot.slane %v1230_v31, 2 }
0x145f   : > { %v1232_v55 = vmax.f32 %v1230_v31, %v1231_v17 }
0x1461   : > { %v1233_v34 = vrot.slane %v1232_v55, 1 }
0x1463   : > { %v1234_v19 = vmax.f32 %v1232_v55, %v1233_v34 }
0x1465   : > { %1545 = vpush %v1234_v19 }
0x1496   : > { %s1546_s1 = spop %1545 }
0x1497   : > { %v1236_v0 = vstv %s1546_s1 }
0x1498   : > { %vm1237_vm7 = vcmp.ge.f32.partialorder %v2231_v45, %v1236_v0  ;;  %vm1238_vm8 = vcmp.ge.f32.partialorder %v2234_v46, %v1236_v0  ;;  %vm1239_vm9 = vcmp.ge.f32.partialorder %v2237_v21, %v1236_v0  ;;  %vm1240_vm10 = vcmp.ge.f32.partialorder %v2240_v26, %v1236_v0 }
0x1499   : > { %v1241_v1 = vsel %vm1237_vm7, %v1751_v30, 1073741824  ;;  %v1242_v35 = vsel %vm1238_vm8, %v1789_v49, 1073741824  ;;  %v1243_v36 = vsel %vm1239_vm9, %v1760_v42, 1073741824  ;;  %v1244_v37 = vsel %vm1240_vm10, %v1780_v7, 1073741824 }
0x149a   : > { %vm1245_vm12 = vcmp.lt.s32.totalorder %v1241_v1, %v1242_v35  ;;  %vm1247_vm13 = vcmp.lt.s32.totalorder %v1243_v36, %v1244_v37 }
0x149b   : > { %v1246_v38 = vsel %vm1245_vm12, %v1241_v1, %v1242_v35  ;;  %v1248_v22 = vsel %vm1247_vm13, %v1243_v36, %v1244_v37 }
0x149c   : > { %vm1249_vm14 = vcmp.lt.s32.totalorder %v1246_v38, %v1248_v22 }
0x149d   : > { %v1250_v39 = vsel %vm1249_vm14, %v1246_v38, %v1248_v22 }
0x149e   : > { %v1251_v47 = vrot.slane %v1250_v39, 4 }
0x14a0   : > { %vm1252_vm15 = vcmp.lt.s32.totalorder %v1250_v39, %v1251_v47 }
0x14a1   : > { %v1253_v24 = vsel %vm1252_vm15, %v1250_v39, %v1251_v47 }
0x14a2   : > { %v1254_v6 = vrot.slane %v1253_v24, 2 }
0x14a4   : > { %vm1255_vm0 = vcmp.lt.s32.totalorder %v1253_v24, %v1254_v6 }
0x14a5   : > { %v1256_v8 = vsel %vm1255_vm0, %v1253_v24, %v1254_v6 }
0x14a6   : > { %v1257_v48 = vrot.slane %v1256_v8, 1 }
0x14a8   : > { %vm1258_vm1 = vcmp.lt.s32.totalorder %v1256_v8, %v1257_v48 }
0x14a9   : > { %v1259_v50 = vsel %vm1258_vm1, %v1256_v8, %v1257_v48 }
0x14aa   : > { %1547 = vpush %v1259_v50 }
0x14db   : > { %s2254_s13 = spop %1547 }
0x14dc   : > { %s1261_s14 = sshra.s32 %s2254_s13, 3  ;;  %s1264_s15 = sand.u32 7, %s2254_s13  ;;  %v1348_v38 = vstv %s2254_s13 }
0x14dd   : > { %s1488_s16 = sshll.u32 %s1261_s14, 4  ;;  %s1479_s21 = sshll.u32 %s2254_s13, 8  ;;  %vm1350_vm12 = vcmp.eq.s32.totalorder %v1789_v49, %v1348_v38  ;;  %vm1351_vm13 = vcmp.eq.s32.totalorder %v1760_v42, %v1348_v38  ;;  %vm1352_vm14 = vcmp.eq.s32.totalorder %v1780_v7, %v1348_v38 }
0x14de   : > { %s2258_s17 = sadd.s32 %s1488_s16, %s1264_s15 }
0x14df   : > { %s1268_s18 = scalar_lea.vmem [#allocation2], %s2258_s17 }
0x14e0   : > { %v1269_v51 = vld [vmem:[%s1268_s18] ss:$8 sm:$0x3] }
0x14e1   : > { %vm1270_vm2 = vcmp.ge.f32.partialorder %v1269_v51, %v1236_v0  ;;  %v1319_v43 = vrot.slane %v1269_v51, %v1851_v62  ;;  %v1323_v27 = vrot.slane %v1269_v51, %v1854_v63 }
0x14e2   : > { %v1271_v52 = vsel %vm1270_vm2, %v1845_v60, 1073741824 }
0x14e3   : > { %v1275_v15 = vrot.slane %v1271_v52, %v1851_v62  ;;  %v1279_v53 = vrot.slane %v1271_v52, %v1854_v63 }
0x14e5   : > { %v1280_v61 = vsel %vm260_vm3, %v1275_v15, 2147483647  ;;  %v1281_v16 = vsel %vm260_vm3, %v1279_v53, 2147483647 }
0x14e6   : > { %vm1282_vm4 = vcmp.lt.s32.totalorder %v1280_v61, %v1281_v16 }
0x14e7   : > { %v1283_v2 = vsel %vm1282_vm4, %v1280_v61, %v1281_v16 }
0x14e8   : > { %v1285_v3 = vshra.s32 %v1283_v2, 16  ;;  %v1284_v4 = vand.u32 65535, %v1283_v2 }
0x14ea   : > { %v1287_v23 = vcvt.s32.f32 %v1285_v3  ;;  %v1286_v56 = vcvt.s32.f32 %v1284_v4 }
0x14ec   : > { %1288 = vmin.xlane.f32.xlu1 %v1287_v23 }
0x1579   : > { %v1289_v5 = vpop.xlane.xlu1 %1288 }
0x157a   : > { %vm1290_vm5 = vcmp.eq.f32.partialorder %v1287_v23, %v1289_v5  ;;  %v1295_v60 = vcvt.f32.s32 %v1289_v5 }
0x157b   : > { %v1291_v25 = vsel %vm1290_vm5, %v1286_v56, inf }
0x157c   : > { %1292 = vmin.xlane.f32.xlu0 %v1291_v25  ;;  %v1296_v59 = vshll.u32 %v1295_v60, 16 }
0x1609   : > { %v1293_v9 = vpop.xlane.xlu0 %1292 }
0x160a   : > { %v1294_v32 = vcvt.f32.s32 %v1293_v9 }
0x160c   : > { %v1297_v33 = vadd.s32 %v1296_v59, %v1294_v32 }
0x160e   : > { %v1298_v10 = vrot.slane %v1297_v33, 4 }
0x1610   : > { %vm1299_vm6 = vcmp.lt.s32.totalorder %v1297_v33, %v1298_v10 }
0x1611   : > { %v1300_v11 = vsel %vm1299_vm6, %v1297_v33, %v1298_v10 }
0x1612   : > { %v1301_v12 = vrot.slane %v1300_v11, 2 }
0x1614   : > { %vm1302_vm7 = vcmp.lt.s32.totalorder %v1300_v11, %v1301_v12 }
0x1615   : > { %v1303_v13 = vsel %vm1302_vm7, %v1300_v11, %v1301_v12 }
0x1616   : > { %v1304_v41 = vrot.slane %v1303_v13, 1 }
0x1618   : > { %vm1305_vm8 = vcmp.lt.s32.totalorder %v1303_v13, %v1304_v41 }
0x1619   : > { %v1306_v14 = vsel %vm1305_vm8, %v1303_v13, %v1304_v41 }
0x161a   : > { %1549 = vpush %v1306_v14 }
0x164b   : > { %s1550_s20 = spop %1549 }
0x164c   : > { %s1309_s22 = sadd.s32 %s1550_s20, %s1479_s21  ;;  %v1312_v20 = vstv %s1550_s20 }
0x164d   : > { %1311 = sst [smem:[%s1431_s19]] %s1309_s22  ;;  %vm1313_vm9 = vcmp.eq.s32.totalorder %v1763_v44, %v1312_v20  ;;  %vm1314_vm10 = vcmp.eq.s32.totalorder %v1774_v57, %v1312_v20 }
0x164e   : > { %v1326_v28 = vsel %vm1313_vm9, -3e+38, %v1319_v43  ;;  %v1327_v54 = vsel %vm1314_vm10, -3e+38, %v1323_v27 }
0x164f   : > { %v1353_v29 = vsel %vm260_vm3, %v1326_v28, -inf  ;;  %v1354_v31 = vsel %vm260_vm3, %v1327_v54, -inf  ;;  %v1330_v17 = vcombine.low %v1326_v28, %v1327_v54  ;;  %vm1349_vm3 = vcmp.eq.s32.totalorder %v1751_v30, %v1348_v38 }
0x1650   : > { %v1355_v55 = vmax.f32 %v1353_v29, %v1354_v31 }
0x1651   : > { %v1337_v34 = vrot.slane %v1330_v17, %v1835_v58 }
0x1652   : > { %1356 = vmax.xlane.f32.xlu1 %v1355_v55 }
0x1653   : > { %v1344_v62 = vrot.slane %v1337_v34, %v1835_v58 }
0x1655   : > { %1346 = vst.msk [vmem:[%s1268_s18] ss:$8 sm:$0x3] %vm1874_vm11, %v1344_v62 }
0x16df   : > { %v1357_v63 = vpop.xlane.xlu1 %1356 }
0x16e0   : > { %v1358_v19 = vrot.slane %v1357_v63, 4 }
0x16e2   : > { %v1359_v0 = vmax.f32 %v1357_v63, %v1358_v19 }
0x16e4   : > { %v1360_v1 = vrot.slane %v1359_v0, 2 }
0x16e6   : > { %v1361_v35 = vmax.f32 %v1359_v0, %v1360_v1 }
0x16e8   : > { %v1362_v36 = vrot.slane %v1361_v35, 1 }
0x16ea   : > { %v1363_v37 = vmax.f32 %v1361_v35, %v1362_v36 }
0x16ec   : > { %1551 = vpush %v1363_v37 }
0x1719   :  { %184 = sbr.rel (!%p182_p0) target bundleno = 200 (0xc8), region = 51 }
0x171d   : > { %s1552_s23 = spop %1551 }
0x171e   : > { %v1365_v58 = vstv %s1552_s23 }
0x171f   : > { %v1366_v23 = vsel %vm1349_vm3, %v1365_v58, %v2231_v45   ;;  %v1367_v25 = vsel %vm1350_vm12, %v1365_v58, %v2234_v46   ;;  %v1368_v22 = vsel %vm1351_vm13, %v1365_v58, %v2237_v21   ;;  %v1369_v24 = vsel %vm1352_vm14, %v1365_v58, %v2240_v26  }
0x1720   :  { %1654 = shalt.err (!%p1651_p5)
}
0x1721   :  { %s1698_s28 = smov [#allocation3]  }
0x1722   :  { %1379 = dma.smem_to_vmem %s1698_s28, 32, %s1377_s26, [#allocation4]  }
0x1723   :  { %1675 = dma.done.wait [#allocation4], 32  }
0x1724   :  { %1676 = vsyncadd [#allocation4], 4294967264 }
0x1725   :  { %1383 = sfence }
0x1726   :  { %1384 = vsyncpa [#allocation4], 1 }

</bundles_post_ra>
